<compile_context>
chip_gen: v7x
topology: tpu7x:2x2x1
jax: 0.10.0
libtpu: 0.0.40
codegen_flags: <defaults>
</compile_context>

<pallas_src>
import functools

import numpy as np
import jax
import jax.numpy as jnp
from jax.experimental import pallas as pl
from jax.experimental.pallas import tpu as pltpu  # noqa: F401  (TPU backend)

# Conv geometry of the module (kernel, stride); padding = 0 everywhere.
K1, S1 = 8, 4
K2, S2 = 4, 2
K3, S3 = 3, 1
C_IN, C1, C2, C3 = 3, 32, 64, 64


# ----------------------------------------------------------------------------
# Parameter construction (mirrors the PyTorch module __init__ / init_weights)
# ----------------------------------------------------------------------------
def output_size(in_size, kernel_sizes, strides, paddings):
    h, w = in_size
    for k, s, p in zip(kernel_sizes, strides, paddings):
        h = (h - k + 2 * p) // s + 1
        w = (w - k + 2 * p) // s + 1
    return [h, w]


def _linear_init(key, fan_in, fan_out):
    w = 0.1 * jax.random.normal(key, (fan_in, fan_out), jnp.float32)  # std=0.1
    b = jnp.full((fan_out,), 0.1, jnp.float32)                        # bias=0.1
    return w, b


def _conv_init(key, cout, cin, k):
    fan_in = cin * k * k
    fan_out = cout * k * k
    std = (2.0 / (fan_in + fan_out)) ** 0.5                           # xavier_normal_
    w = std * jax.random.normal(key, (cout, cin, k, k), jnp.float32)
    b = jnp.zeros((cout,), jnp.float32)                               # bias=0
    return w, b


def init_params(key, image_shape, sens2_shape, num_outputs):
    fc_size = output_size(image_shape, [K1, K2, K3], [S1, S2, S3], [0, 0, 0])
    flat = fc_size[0] * fc_size[1] * C3
    ks = jax.random.split(key, 10)
    p = {}
    p["c1_w"], p["c1_b"] = _conv_init(ks[0], C1, C_IN, K1)
    p["c2_w"], p["c2_b"] = _conv_init(ks[1], C2, C1, K2)
    p["c3_w"], p["c3_b"] = _conv_init(ks[2], C3, C2, K3)
    p["cnn_fc_w"], p["cnn_fc_b"] = _linear_init(ks[3], flat, num_outputs * 5)
    p["fc0_w"], p["fc0_b"] = _linear_init(ks[4], sens2_shape, num_outputs * 5)
    p["fc1_w"], p["fc1_b"] = _linear_init(ks[5], num_outputs * 10, num_outputs * 20)
    p["fc2_w"], p["fc2_b"] = _linear_init(ks[6], num_outputs * 20, num_outputs * 10)
    p["fc3_w"], p["fc3_b"] = _linear_init(ks[7], num_outputs * 10, num_outputs * 5)
    p["fc4_w"], p["fc4_b"] = _linear_init(ks[8], num_outputs * 5, num_outputs)
    p["log_std"] = jnp.full((1, num_outputs), -0.5, jnp.float32)      # unused in forward
    return p


def _r8(x):
    return (x + 7) // 8 * 8


# ----------------------------------------------------------------------------
# One-time prep: fold / repack PyTorch weights into kernel-ready packed slabs
# ----------------------------------------------------------------------------
def prepare_params(params, image_shape, sens2_shape, num_outputs, batch):
    H, W = image_shape
    H1, W1 = (H - K1) // S1 + 1, (W - K1) // S1 + 1
    H2, W2 = (H1 - K2) // S2 + 1, (W1 - K2) // S2 + 1
    H3, W3 = (H2 - K3) // S3 + 1, (W2 - K3) // S3 + 1
    # TODO(synk): general H3*W3 > 1 would need PyTorch's NCHW flatten order before cnn_fc.
    assert H3 == 1 and W3 == 1 and K3 == H2 and K3 == W2, \
        "fused kernel assumes conv3 output is 1x1 spatially"

    KC = K1 + (K2 - 1) * S1          # composite conv1∘conv2 kernel (20)
    SC = S1 * S2                     # composite stride (8)
    P2 = K2 * K2                     # conv2 kernel positions (16)
    P3 = H2 * W2                     # conv2 output / conv3 patch positions (9)
    rows = batch * P3                # conv2-patch row count (18)
    patch_w = KC * KC * C_IN         # composite patch width (1200)
    d5, d10, d20 = num_outputs * 5, num_outputs * 10, num_outputs * 20

    to_np = lambda a: np.asarray(a, np.float32)

    # ---- composite im2col gather indices (into the flattened (H, W, C) image) ----
    idx = np.empty((P3, patch_w), np.int32)
    for oh in range(H2):
        for ow in range(W2):
            p = oh * W2 + ow
            for ph in range(KC):
                for pw in range(KC):
                    base = ((oh * SC + ph) * W + (ow * SC + pw)) * C_IN
                    col = (ph * KC + pw) * C_IN
                    idx[p, col:col + C_IN] = np.arange(base, base + C_IN, dtype=np.int32)

    # ---- conv1: fold (x-127)/255 into the weight, then place one copy of the (192,32)
    #      weight per conv2 kernel position into the composite (1200,512) matrix ----
    w1_flat = to_np(jnp.transpose(params["c1_w"], (2, 3, 1, 0)).reshape(K1 * K1 * C_IN, C1))
    w1n = w1_flat / 255.0
    b1n = to_np(params["c1_b"]) - (127.0 / 255.0) * w1_flat.sum(axis=0)
    w1comp = np.zeros((patch_w, P2 * C1), np.float32)
    for ih2 in range(K2):
        for iw2 in range(K2):
            i = ih2 * K2 + iw2
            for kh in range(K1):
                for kw in range(K1):
                    src = (kh * K1 + kw) * C_IN
                    dst = ((ih2 * S1 + kh) * KC + (iw2 * S1 + kw)) * C_IN
                    w1comp[dst:dst + C_IN, i * C1:(i + 1) * C1] = w1n[src:src + C_IN, :]
    off_b1 = patch_w
    w1slab = np.zeros((_r8(off_b1 + 1), P2 * C1), np.float32)
    w1slab[:patch_w] = w1comp
    w1slab[off_b1] = np.tile(b1n, P2)

    # ---- conv2 weight (kpos,cin)-major, plus the exact 0/1 conv3 reduction constants ----
    w2flat = to_np(jnp.transpose(params["c2_w"], (2, 3, 1, 0)).reshape(P2 * C1, C2))
    esum = np.tile(np.eye(C3, dtype=np.float32), (P3, 1))                          # (576, 64)
    ssum = np.kron(np.eye(batch, dtype=np.float32), np.ones((1, P3), np.float32))  # (B, B*P3)
    off_esum = P2 * C1
    off_b2 = off_esum + P3 * C3
    off_b3 = _r8(off_b2 + 1)
    off_ssum = _r8(off_b3 + 1)
    w2slab = np.zeros((_r8(off_ssum + batch), C2), np.float32)
    w2slab[:off_esum] = w2flat
    w2slab[off_esum:off_b2] = esum
    w2slab[off_b2] = to_np(params["c2_b"])
    w2slab[off_b3] = to_np(params["c3_b"])
    w2slab[off_ssum:off_ssum + batch, :rows] = ssum

    # ---- conv3 weight concatenated over patch positions + the row/block 0/1 mask ----
    w3t = to_np(params["c3_w"]).transpose(2, 3, 1, 0).reshape(P3, C2, C3)   # (p, cin, cout)
    w3concat = w3t.transpose(1, 0, 2).reshape(C2, P3 * C3)                  # (64, 576)
    mask = np.zeros((rows, P3 * C3), np.float32)
    for b in range(batch):
        for p in range(P3):
            mask[b * P3 + p, p * C3:(p + 1) * C3] = 1.0
    off_mask = _r8(C2)
    w3slab = np.zeros((_r8(off_mask + rows), P3 * C3), np.float32)
    w3slab[:C2] = w3concat
    w3slab[off_mask:off_mask + rows] = mask

    # ---- MLP head: fold cnn_fc into fc1's first block; pack everything in one f32 slab ----
    wc, bc = to_np(params["cnn_fc_w"]), to_np(params["cnn_fc_b"])
    w1a, w1b = to_np(params["fc1_w"][:d5]), to_np(params["fc1_w"][d5:])
    w1a_f = wc @ w1a                                     # (64, no*20)
    bh1_f = to_np(params["fc1_b"]) + bc @ w1a            # (no*20,)
    head_w = max(128, -(-d20 // 128) * 128)
    off_w1a = 0
    off_w1b = _r8(C3)
    off_wh2 = off_w1b + _r8(d5)
    off_wh3 = off_wh2 + _r8(d20)
    off_wh4 = off_wh3 + _r8(d10)
    off_w0 = off_wh4 + _r8(d5)
    off_bias = off_w0 + _r8(sens2_shape)
    headslab = np.zeros((off_bias + 5 * 8, head_w), np.float32)
    headslab[off_w1a:off_w1a + C3, :d20] = w1a_f
    headslab[off_w1b:off_w1b + d5, :d20] = w1b
    headslab[off_wh2:off_wh2 + d20, :d10] = to_np(params["fc2_w"])
    headslab[off_wh3:off_wh3 + d10, :d5] = to_np(params["fc3_w"])
    headslab[off_wh4:off_wh4 + d5, :num_outputs] = to_np(params["fc4_w"])
    headslab[off_w0:off_w0 + sens2_shape, :d5] = to_np(params["fc0_w"])
    headslab[off_bias + 0, :d20] = bh1_f
    headslab[off_bias + 8, :d10] = to_np(params["fc2_b"])
    headslab[off_bias + 16, :d5] = to_np(params["fc3_b"])
    headslab[off_bias + 24, :num_outputs] = to_np(params["fc4_b"])
    headslab[off_bias + 32, :d5] = to_np(params["fc0_b"])

    prep = {
        "im2col_idx": jnp.asarray(idx),
        "w1slab": jnp.asarray(w1slab, jnp.bfloat16),
        "w2slab": jnp.asarray(w2slab, jnp.bfloat16),
        "w3slab": jnp.asarray(w3slab, jnp.bfloat16),
        "headslab": jnp.asarray(headslab, jnp.float32),
    }
    meta = dict(
        batch=batch, rows=rows, p3=P3, patch_w=patch_w,
        k_w1=P2 * C1, off_b1=off_b1,
        off_esum=off_esum, n_esum=P3 * C3, off_b2=off_b2, off_b3=off_b3, off_ssum=off_ssum,
        off_mask=off_mask, c2=C2, c3=C3,
        off_w1a=off_w1a, off_w1b=off_w1b, off_wh2=off_wh2, off_wh3=off_wh3,
        off_wh4=off_wh4, off_w0=off_w0, off_bias=off_bias,
        d5=d5, d10=d10, d20=d20, no=num_outputs, s2dim=sens2_shape,
    )
    return prep, meta


# ----------------------------------------------------------------------------
# The single fused Pallas kernel (11 MXU matmuls total, 6 operand DMAs)
# ----------------------------------------------------------------------------
def _make_kernel(meta):
    m = dict(meta)
    bf16, f32 = jnp.bfloat16, jnp.float32

    def kernel(cols_ref, sens2_ref, w1_ref, w2_ref, w3_ref, head_ref, o_ref):
        relu = lambda v: jnp.maximum(v, 0.0)
        dot = functools.partial(jnp.dot, preferred_element_type=f32)

        # conv1 (input normalization pre-folded), evaluated per conv2 patch position.
        a1 = dot(cols_ref[...], w1_ref[0:m["patch_w"], :])
        a1 = relu(a1 + w1_ref[m["off_b1"]:m["off_b1"] + 1, :].astype(f32))       # (B*P3, 512)

        # conv2 as one (kpos*cin -> cout) matmul.
        h2 = dot(a1.astype(bf16), w2_ref[0:m["k_w1"], :])
        h2 = relu(h2 + w2_ref[m["off_b2"]:m["off_b2"] + 1, :].astype(f32))       # (B*P3, 64)

        # conv3 (1x1 spatial output): per-position products in one wide matmul, then a
        # constant 0/1 row-block mask and two exact 0/1 reduction matmuls (kept f32).
        y = dot(h2.astype(bf16), w3_ref[0:m["c2"], :])                           # (B*P3, 576)
        y = y * w3_ref[m["off_mask"]:m["off_mask"] + m["rows"], :].astype(f32)
        ssum = w2_ref[m["off_ssum"]:m["off_ssum"] + m["batch"], 0:m["rows"]].astype(f32)
        zb = dot(ssum, y)                                                        # (B, 576)
        esum = w2_ref[m["off_esum"]:m["off_esum"] + m["n_esum"], :].astype(f32)
        b3 = w2_ref[m["off_b3"]:m["off_b3"] + 1, :].astype(f32)
        h3 = relu(dot(zb, esum) + b3)                                            # (B, 64)

        # sensor branch: fc0 + relu.
        s2 = sens2_ref[...].astype(bf16)
        w0 = head_ref[m["off_w0"]:m["off_w0"] + m["s2dim"], 0:m["d5"]].astype(bf16)
        b0 = head_ref[m["off_bias"] + 32:m["off_bias"] + 33, 0:m["d5"]]
        x2 = relu(dot(s2, w0) + b0)                                              # (B, no*5)

        # fc1 with cnn_fc pre-folded into its first block and torch.cat eliminated.
        w1a = head_ref[m["off_w1a"]:m["off_w1a"] + m["c3"], 0:m["d20"]].astype(bf16)
        w1b = head_ref[m["off_w1b"]:m["off_w1b"] + m["d5"], 0:m["d20"]].astype(bf16)
        bh1 = head_ref[m["off_bias"]:m["off_bias"] + 1, 0:m["d20"]]
        h = relu(dot(h3.astype(bf16), w1a) + dot(x2.astype(bf16), w1b) + bh1)    # (B, no*20)

        wh2 = head_ref[m["off_wh2"]:m["off_wh2"] + m["d20"], 0:m["d10"]].astype(bf16)
        bh2 = head_ref[m["off_bias"] + 8:m["off_bias"] + 9, 0:m["d10"]]
        h = relu(dot(h.astype(bf16), wh2) + bh2)                                 # (B, no*10)

        wh3 = head_ref[m["off_wh3"]:m["off_wh3"] + m["d10"], 0:m["d5"]].astype(bf16)
        bh3 = head_ref[m["off_bias"] + 16:m["off_bias"] + 17, 0:m["d5"]]
        h = relu(dot(h.astype(bf16), wh3) + bh3)                                 # (B, no*5)

        wh4 = head_ref[m["off_wh4"]:m["off_wh4"] + m["d5"], 0:m["no"]].astype(bf16)
        bh4 = head_ref[m["off_bias"] + 24:m["off_bias"] + 25, 0:m["no"]]
        mu = jnp.tanh(dot(h.astype(bf16), wh4) + bh4)                            # (B, no)
        o_ref[...] = mu.astype(o_ref.dtype)

    return kernel


def forward(prep, image_nhwc, sens2, meta):
    """mu = forward((image NHWC, sens2)) — one fused pallas_call, no grid (tiny batch)."""
    B = image_nhwc.shape[0]
    assert B == meta["batch"], "prep/meta were baked for a different batch size"
    H, W, C = image_nhwc.shape[1:]
    # Composite-receptive-field im2col: a single gather with precomputed indices.
    flat = image_nhwc.reshape(B, H * W * C)
    cols = flat[:, prep["im2col_idx"]]                       # (B, P3, patch_w)
    cols = cols.reshape(B * meta["p3"], meta["patch_w"]).astype(jnp.bfloat16)

    return pl.pallas_call(
        _make_kernel(meta),
        out_shape=jax.ShapeDtypeStruct((B, meta["no"]), jnp.float32),
    )(cols, sens2.astype(jnp.float32),
      prep["w1slab"], prep["w2slab"], prep["w3slab"], prep["headslab"])


# ----------------------------------------------------------------------------
# Pure-JAX f32 reference (mirrors the PyTorch forward) for the correctness check
# ----------------------------------------------------------------------------
def forward_ref(params, image_nhwc, sens2):
    x0 = (image_nhwc.astype(jnp.float32) - 127.0) / 255.0
    x0 = x0.transpose(0, 3, 1, 2)

    def conv(x, w, b, s):
        y = jax.lax.conv_general_dilated(
            x, w, window_strides=(s, s), padding="VALID",
            dimension_numbers=("NCHW", "OIHW", "NCHW"))
        return y + b[None, :, None, None]

    h = jax.nn.relu(conv(x0, params["c1_w"], params["c1_b"], S1))
    h = jax.nn.relu(conv(h, params["c2_w"], params["c2_b"], S2))
    h = jax.nn.relu(conv(h, params["c3_w"], params["c3_b"], S3))
    h = h.reshape(h.shape[0], -1)
    x1 = h @ params["cnn_fc_w"] + params["cnn_fc_b"]
    x2 = jax.nn.relu(sens2 @ params["fc0_w"] + params["fc0_b"])
    x = jnp.concatenate([x1, x2], axis=1)
    x = jax.nn.relu(x @ params["fc1_w"] + params["fc1_b"])
    x = jax.nn.relu(x @ params["fc2_w"] + params["fc2_b"])
    x = jax.nn.relu(x @ params["fc3_w"] + params["fc3_b"])
    return jnp.tanh(x @ params["fc4_w"] + params["fc4_b"])


if __name__ == "__main__":
    # 36x36x3 image (conv stack -> 1x1x64), sens2 vector of 8, 4 outputs, batch 2.
    batch = 2
    image_shape = [36, 36]
    sens2_shape = 8
    num_outputs = 4

    key = jax.random.PRNGKey(0)
    k_img, k_sens, k_param = jax.random.split(key, 3)

    image = jax.random.uniform(k_img, (batch, image_shape[0], image_shape[1], 3),
                               jnp.float32, 0.0, 255.0)
    sens2 = jax.random.normal(k_sens, (batch, sens2_shape), jnp.float32)

    params = init_params(k_param, image_shape, sens2_shape, num_outputs)
    prep, meta = prepare_params(params, image_shape, sens2_shape, num_outputs, batch)

    fwd = jax.jit(lambda p, img, s2: forward(p, img, s2, meta))
    mu = jax.block_until_ready(fwd(prep, image, sens2))

    mu_ref = jax.block_until_ready(forward_ref(params, image, sens2))
    assert mu.shape == (batch, num_outputs)
    # conv stack + head use bf16 MXU operands (f32 accumulation); tolerance sized accordingly.
    assert jnp.allclose(mu, mu_ref, atol=2e-2, rtol=2e-2), (mu, mu_ref)

    print("KERNEL_OK")
</pallas_src>

<mosaic_0001>
module attributes {stable_mosaic.version = 11 : i64} {
  func.func @kernel(%arg0: memref<18x1200xbf16, #tpu.memory_space<vmem>>, %arg1: memref<2x8xf32, #tpu.memory_space<vmem>>, %arg2: memref<1208x512xbf16, #tpu.memory_space<vmem>>, %arg3: memref<1112x64xbf16, #tpu.memory_space<vmem>>, %arg4: memref<88x576xbf16, #tpu.memory_space<vmem>>, %arg5: memref<280x128xf32, #tpu.memory_space<vmem>>, %arg6: memref<2x4xf32, #tpu.memory_space<vmem>>) attributes {dimension_semantics = [], scalar_prefetch = 0 : i64, scratch_operands = 0 : i64, tpu.core_type = #tpu.core_type<tc>} {
    %c0 = arith.constant 0 : index
    %c0_0 = arith.constant 0 : index
    %0 = vector.load %arg0[%c0, %c0_0] : memref<18x1200xbf16, #tpu.memory_space<vmem>>, vector<18x1200xbf16>
    %c0_1 = arith.constant 0 : index
    %c0_2 = arith.constant 0 : index
    %1 = vector.load %arg2[%c0_1, %c0_2] : memref<1208x512xbf16, #tpu.memory_space<vmem>>, vector<1200x512xbf16>
    %cst = arith.constant dense<0.000000e+00> : vector<18x512xf32>
    %2 = tpu.matmul %0, %1, %cst {dimension_numbers = #tpu.dot_dimension_numbers<[1], [0], [0], [1], [0, 0, 1, 1], [], []>} : vector<18x1200xbf16>, vector<1200x512xbf16>, vector<18x512xf32> -> vector<18x512xf32>
    %c1200 = arith.constant 1200 : index
    %c0_3 = arith.constant 0 : index
    %3 = vector.load %arg2[%c1200, %c0_3] : memref<1208x512xbf16, #tpu.memory_space<vmem>>, vector<1x512xbf16>
    %4 = arith.extf %3 : vector<1x512xbf16> to vector<1x512xf32>
    %5 = vector.broadcast %4 : vector<1x512xf32> to vector<18x512xf32>
    %6 = arith.addf %2, %5 : vector<18x512xf32>
    %cst_4 = arith.constant 0.000000e+00 : f32
    %7 = vector.broadcast %cst_4 : f32 to vector<18x512xf32>
    %8 = arith.maximumf %6, %7 : vector<18x512xf32>
    %9 = arith.truncf %8 : vector<18x512xf32> to vector<18x512xbf16>
    %c0_5 = arith.constant 0 : index
    %c0_6 = arith.constant 0 : index
    %10 = vector.load %arg3[%c0_5, %c0_6] : memref<1112x64xbf16, #tpu.memory_space<vmem>>, vector<512x64xbf16>
    %cst_7 = arith.constant dense<0.000000e+00> : vector<18x64xf32>
    %11 = tpu.matmul %9, %10, %cst_7 {dimension_numbers = #tpu.dot_dimension_numbers<[1], [0], [0], [1], [0, 0, 1, 1], [], []>} : vector<18x512xbf16>, vector<512x64xbf16>, vector<18x64xf32> -> vector<18x64xf32>
    %c1088 = arith.constant 1088 : index
    %c0_8 = arith.constant 0 : index
    %12 = vector.load %arg3[%c1088, %c0_8] : memref<1112x64xbf16, #tpu.memory_space<vmem>>, vector<1x64xbf16>
    %13 = arith.extf %12 : vector<1x64xbf16> to vector<1x64xf32>
    %14 = vector.broadcast %13 : vector<1x64xf32> to vector<18x64xf32>
    %15 = arith.addf %11, %14 : vector<18x64xf32>
    %cst_9 = arith.constant 0.000000e+00 : f32
    %16 = vector.broadcast %cst_9 : f32 to vector<18x64xf32>
    %17 = arith.maximumf %15, %16 : vector<18x64xf32>
    %18 = arith.truncf %17 : vector<18x64xf32> to vector<18x64xbf16>
    %c0_10 = arith.constant 0 : index
    %c0_11 = arith.constant 0 : index
    %19 = vector.load %arg4[%c0_10, %c0_11] : memref<88x576xbf16, #tpu.memory_space<vmem>>, vector<64x576xbf16>
    %cst_12 = arith.constant dense<0.000000e+00> : vector<18x576xf32>
    %20 = tpu.matmul %18, %19, %cst_12 {dimension_numbers = #tpu.dot_dimension_numbers<[1], [0], [0], [1], [0, 0, 1, 1], [], []>} : vector<18x64xbf16>, vector<64x576xbf16>, vector<18x576xf32> -> vector<18x576xf32>
    %c64 = arith.constant 64 : index
    %c0_13 = arith.constant 0 : index
    %21 = vector.load %arg4[%c64, %c0_13] : memref<88x576xbf16, #tpu.memory_space<vmem>>, vector<18x576xbf16>
    %22 = arith.extf %21 : vector<18x576xbf16> to vector<18x576xf32>
    %23 = arith.mulf %20, %22 : vector<18x576xf32>
    %c1104 = arith.constant 1104 : index
    %c0_14 = arith.constant 0 : index
    %24 = vector.load %arg3[%c1104, %c0_14] : memref<1112x64xbf16, #tpu.memory_space<vmem>>, vector<2x18xbf16>
    %25 = arith.extf %24 : vector<2x18xbf16> to vector<2x18xf32>
    %cst_15 = arith.constant dense<0.000000e+00> : vector<2x576xf32>
    %26 = tpu.matmul %25, %23, %cst_15 {dimension_numbers = #tpu.dot_dimension_numbers<[1], [0], [0], [1], [0, 0, 1, 1], [], []>} : vector<2x18xf32>, vector<18x576xf32>, vector<2x576xf32> -> vector<2x576xf32>
    %c512 = arith.constant 512 : index
    %c0_16 = arith.constant 0 : index
    %27 = vector.load %arg3[%c512, %c0_16] : memref<1112x64xbf16, #tpu.memory_space<vmem>>, vector<576x64xbf16>
    %28 = arith.extf %27 : vector<576x64xbf16> to vector<576x64xf32>
    %c1096 = arith.constant 1096 : index
    %c0_17 = arith.constant 0 : index
    %29 = vector.load %arg3[%c1096, %c0_17] : memref<1112x64xbf16, #tpu.memory_space<vmem>>, vector<1x64xbf16>
    %30 = arith.extf %29 : vector<1x64xbf16> to vector<1x64xf32>
    %cst_18 = arith.constant dense<0.000000e+00> : vector<2x64xf32>
    %31 = tpu.matmul %26, %28, %cst_18 {dimension_numbers = #tpu.dot_dimension_numbers<[1], [0], [0], [1], [0, 0, 1, 1], [], []>} : vector<2x576xf32>, vector<576x64xf32>, vector<2x64xf32> -> vector<2x64xf32>
    %32 = vector.broadcast %30 : vector<1x64xf32> to vector<2x64xf32>
    %33 = arith.addf %31, %32 : vector<2x64xf32>
    %cst_19 = arith.constant 0.000000e+00 : f32
    %34 = vector.broadcast %cst_19 : f32 to vector<2x64xf32>
    %35 = arith.maximumf %33, %34 : vector<2x64xf32>
    %c0_20 = arith.constant 0 : index
    %c0_21 = arith.constant 0 : index
    %36 = vector.load %arg1[%c0_20, %c0_21] : memref<2x8xf32, #tpu.memory_space<vmem>>, vector<2x8xf32>
    %37 = arith.truncf %36 : vector<2x8xf32> to vector<2x8xbf16>
    %c232 = arith.constant 232 : index
    %c0_22 = arith.constant 0 : index
    %38 = vector.load %arg5[%c232, %c0_22] : memref<280x128xf32, #tpu.memory_space<vmem>>, vector<8x20xf32>
    %39 = arith.truncf %38 : vector<8x20xf32> to vector<8x20xbf16>
    %c272 = arith.constant 272 : index
    %c0_23 = arith.constant 0 : index
    %40 = vector.load %arg5[%c272, %c0_23] : memref<280x128xf32, #tpu.memory_space<vmem>>, vector<1x20xf32>
    %cst_24 = arith.constant dense<0.000000e+00> : vector<2x20xf32>
    %41 = tpu.matmul %37, %39, %cst_24 {dimension_numbers = #tpu.dot_dimension_numbers<[1], [0], [0], [1], [0, 0, 1, 1], [], []>} : vector<2x8xbf16>, vector<8x20xbf16>, vector<2x20xf32> -> vector<2x20xf32>
    %42 = vector.broadcast %40 : vector<1x20xf32> to vector<2x20xf32>
    %43 = arith.addf %41, %42 : vector<2x20xf32>
    %cst_25 = arith.constant 0.000000e+00 : f32
    %44 = vector.broadcast %cst_25 : f32 to vector<2x20xf32>
    %45 = arith.maximumf %43, %44 : vector<2x20xf32>
    %c0_26 = arith.constant 0 : index
    %c0_27 = arith.constant 0 : index
    %46 = vector.load %arg5[%c0_26, %c0_27] : memref<280x128xf32, #tpu.memory_space<vmem>>, vector<64x80xf32>
    %47 = arith.truncf %46 : vector<64x80xf32> to vector<64x80xbf16>
    %c64_28 = arith.constant 64 : index
    %c0_29 = arith.constant 0 : index
    %48 = vector.load %arg5[%c64_28, %c0_29] : memref<280x128xf32, #tpu.memory_space<vmem>>, vector<20x80xf32>
    %49 = arith.truncf %48 : vector<20x80xf32> to vector<20x80xbf16>
    %c240 = arith.constant 240 : index
    %c0_30 = arith.constant 0 : index
    %50 = vector.load %arg5[%c240, %c0_30] : memref<280x128xf32, #tpu.memory_space<vmem>>, vector<1x80xf32>
    %51 = arith.truncf %35 : vector<2x64xf32> to vector<2x64xbf16>
    %cst_31 = arith.constant dense<0.000000e+00> : vector<2x80xf32>
    %52 = tpu.matmul %51, %47, %cst_31 {dimension_numbers = #tpu.dot_dimension_numbers<[1], [0], [0], [1], [0, 0, 1, 1], [], []>} : vector<2x64xbf16>, vector<64x80xbf16>, vector<2x80xf32> -> vector<2x80xf32>
    %53 = arith.truncf %45 : vector<2x20xf32> to vector<2x20xbf16>
    %cst_32 = arith.constant dense<0.000000e+00> : vector<2x80xf32>
    %54 = tpu.matmul %53, %49, %cst_32 {dimension_numbers = #tpu.dot_dimension_numbers<[1], [0], [0], [1], [0, 0, 1, 1], [], []>} : vector<2x20xbf16>, vector<20x80xbf16>, vector<2x80xf32> -> vector<2x80xf32>
    %55 = arith.addf %52, %54 : vector<2x80xf32>
    %56 = vector.broadcast %50 : vector<1x80xf32> to vector<2x80xf32>
    %57 = arith.addf %55, %56 : vector<2x80xf32>
    %cst_33 = arith.constant 0.000000e+00 : f32
    %58 = vector.broadcast %cst_33 : f32 to vector<2x80xf32>
    %59 = arith.maximumf %57, %58 : vector<2x80xf32>
    %c88 = arith.constant 88 : index
    %c0_34 = arith.constant 0 : index
    %60 = vector.load %arg5[%c88, %c0_34] : memref<280x128xf32, #tpu.memory_space<vmem>>, vector<80x40xf32>
    %61 = arith.truncf %60 : vector<80x40xf32> to vector<80x40xbf16>
    %c248 = arith.constant 248 : index
    %c0_35 = arith.constant 0 : index
    %62 = vector.load %arg5[%c248, %c0_35] : memref<280x128xf32, #tpu.memory_space<vmem>>, vector<1x40xf32>
    %63 = arith.truncf %59 : vector<2x80xf32> to vector<2x80xbf16>
    %cst_36 = arith.constant dense<0.000000e+00> : vector<2x40xf32>
    %64 = tpu.matmul %63, %61, %cst_36 {dimension_numbers = #tpu.dot_dimension_numbers<[1], [0], [0], [1], [0, 0, 1, 1], [], []>} : vector<2x80xbf16>, vector<80x40xbf16>, vector<2x40xf32> -> vector<2x40xf32>
    %65 = vector.broadcast %62 : vector<1x40xf32> to vector<2x40xf32>
    %66 = arith.addf %64, %65 : vector<2x40xf32>
    %cst_37 = arith.constant 0.000000e+00 : f32
    %67 = vector.broadcast %cst_37 : f32 to vector<2x40xf32>
    %68 = arith.maximumf %66, %67 : vector<2x40xf32>
    %c168 = arith.constant 168 : index
    %c0_38 = arith.constant 0 : index
    %69 = vector.load %arg5[%c168, %c0_38] : memref<280x128xf32, #tpu.memory_space<vmem>>, vector<40x20xf32>
    %70 = arith.truncf %69 : vector<40x20xf32> to vector<40x20xbf16>
    %c256 = arith.constant 256 : index
    %c0_39 = arith.constant 0 : index
    %71 = vector.load %arg5[%c256, %c0_39] : memref<280x128xf32, #tpu.memory_space<vmem>>, vector<1x20xf32>
    %72 = arith.truncf %68 : vector<2x40xf32> to vector<2x40xbf16>
    %cst_40 = arith.constant dense<0.000000e+00> : vector<2x20xf32>
    %73 = tpu.matmul %72, %70, %cst_40 {dimension_numbers = #tpu.dot_dimension_numbers<[1], [0], [0], [1], [0, 0, 1, 1], [], []>} : vector<2x40xbf16>, vector<40x20xbf16>, vector<2x20xf32> -> vector<2x20xf32>
    %74 = vector.broadcast %71 : vector<1x20xf32> to vector<2x20xf32>
    %75 = arith.addf %73, %74 : vector<2x20xf32>
    %cst_41 = arith.constant 0.000000e+00 : f32
    %76 = vector.broadcast %cst_41 : f32 to vector<2x20xf32>
    %77 = arith.maximumf %75, %76 : vector<2x20xf32>
    %c208 = arith.constant 208 : index
    %c0_42 = arith.constant 0 : index
    %78 = vector.load %arg5[%c208, %c0_42] : memref<280x128xf32, #tpu.memory_space<vmem>>, vector<20x4xf32>
    %79 = arith.truncf %78 : vector<20x4xf32> to vector<20x4xbf16>
    %c264 = arith.constant 264 : index
    %c0_43 = arith.constant 0 : index
    %80 = vector.load %arg5[%c264, %c0_43] : memref<280x128xf32, #tpu.memory_space<vmem>>, vector<1x4xf32>
    %81 = arith.truncf %77 : vector<2x20xf32> to vector<2x20xbf16>
    %cst_44 = arith.constant dense<0.000000e+00> : vector<2x4xf32>
    %82 = tpu.matmul %81, %79, %cst_44 {dimension_numbers = #tpu.dot_dimension_numbers<[1], [0], [0], [1], [0, 0, 1, 1], [], []>} : vector<2x20xbf16>, vector<20x4xbf16>, vector<2x4xf32> -> vector<2x4xf32>
    %83 = vector.broadcast %80 : vector<1x4xf32> to vector<2x4xf32>
    %84 = arith.addf %82, %83 : vector<2x4xf32>
    %85 = math.tanh %84 : vector<2x4xf32>
    %c0_45 = arith.constant 0 : index
    %c0_46 = arith.constant 0 : index
    %86 = vector.load %arg6[%c0_45, %c0_46] : memref<2x4xf32, #tpu.memory_space<vmem>>, vector<2x4xf32>
    tpu.vector_store %arg6[%c0_45, %c0_46], %85 {strides = array<i32>} : memref<2x4xf32, #tpu.memory_space<vmem>>, vector<2x4xf32>,
    return
  }
}

</mosaic_0001>

<bundles_post_ra>
// kernel: _lambda_.1
= control target key start
LH: loop header
LB: loop body
LE: loop exit
PB: predicated region body
PF: predicated region fallthrough
CT: control target
= control target key end

     0   :  { %s7203_s0 = inlined_call_operand.vmem [shape: bf16[18,1200], index: 0, kind: input, shape index: {}]   ;;  %s7204_s1 = inlined_call_operand.vmem [shape: f32[2,8], index: 1, kind: input, shape index: {}]   ;;  %s7205_s2 = inlined_call_operand.vmem [shape: bf16[1208,512], index: 2, kind: input, shape index: {}]   ;;  %s7206_s3 = inlined_call_operand.vmem [shape: bf16[1112,64], index: 3, kind: input, shape index: {}]   ;;  %s7207_s4 = inlined_call_operand.vmem [shape: bf16[88,576], index: 4, kind: input, shape index: {}]   ;;  %s7208_s5 = inlined_call_operand.vmem [shape: f32[280,128], index: 5, kind: input, shape index: {}]   ;;  %s7209_s6 = inlined_call_operand.hbm [shape: f32[2,4], index: 6, kind: output, shape index: {}]  }
   0x1   :  { %v5159_v0 = vld [vmem:[%s7205_s2 + $0x4] ss:$16 sps:$4 sm:$0xff]   ;;  %v5161_v1 = vld [vmem:[%s7205_s2 + $0xc] ss:$16 sps:$4 sm:$0xff]   ;;  %v5163_v2 = vld [vmem:[%s7205_s2] ss:$16 sps:$4 sm:$0xff]  }
   0x2   :  { %1952 = vmatprep.subr.bf16.mxu0 %v5159_v0  ;;  %v5164_v3 = vld [vmem:[%s7205_s2 + $0x8] ss:$16 sps:$4 sm:$0xff]   ;;  %2207 = vmatprep.subr.bf16.mxu1 %v5161_v1  ;;  %v5165_v4 = vld [vmem:[%s7205_s2 + $0x24] ss:$16 sps:$4 sm:$0xff]   ;;  %v5167_v5 = vld [vmem:[%s7205_s2 + $0x2c] ss:$16 sps:$4 sm:$0xff]  }
   0x3   :  { %1953 = vmatpush1.bf16.msra.mxu0 %v5163_v2  ;;  %2208 = vmatpush1.bf16.msra.mxu1 %v5164_v3  ;;  %v5169_v6 = vld [vmem:[%s7205_s2 + $0x20] ss:$16 sps:$4 sm:$0xff]   ;;  %v5170_v7 = vld [vmem:[%s7205_s2 + $0x28] ss:$16 sps:$4 sm:$0xff]   ;;  %v5171_v8 = vld [vmem:[%s7205_s2 + $0x44] ss:$16 sps:$4 sm:$0xff]  }
   0x4   :  { %1954 = vmatprep.subr.bf16.mxu0 %v5165_v4  ;;  %2209 = vmatprep.subr.bf16.mxu1 %v5167_v5  ;;  %v5173_v9 = vld [vmem:[%s7205_s2 + $0x4c] ss:$16 sps:$4 sm:$0xff]   ;;  %v5175_v10 = vld [vmem:[%s7205_s2 + $0x40] ss:$16 sps:$4 sm:$0xff]   ;;  %v5176_v11 = vld [vmem:[%s7205_s2 + $0x48] ss:$16 sps:$4 sm:$0xff]  }
   0x5   :  { %v5177_v12 = vld [vmem:[%s7205_s2 + $0x64] ss:$16 sps:$4 sm:$0xff]   ;;  %v5179_v13 = vld [vmem:[%s7205_s2 + $0x6c] ss:$16 sps:$4 sm:$0xff]   ;;  %v5181_v14 = vld [vmem:[%s7205_s2 + $0x60] ss:$16 sps:$4 sm:$0xff]  }
   0x6   :  { %v5182_v15 = vld [vmem:[%s7205_s2 + $0x68] ss:$16 sps:$4 sm:$0xff]   ;;  %v5183_v16 = vld [vmem:[%s7205_s2 + $0x84] ss:$16 sps:$4 sm:$0xff]   ;;  %v5185_v17 = vld [vmem:[%s7205_s2 + $0x8c] ss:$16 sps:$4 sm:$0xff]  }
   0x7   :  { %1955 = vmatpush1.bf16.msra.mxu0 %v5169_v6  ;;  %2210 = vmatpush1.bf16.msra.mxu1 %v5170_v7  ;;  %v5187_v18 = vld [vmem:[%s7205_s2 + $0x80] ss:$16 sps:$4 sm:$0xff]   ;;  %v5188_v19 = vld [vmem:[%s7205_s2 + $0x88] ss:$16 sps:$4 sm:$0xff]   ;;  %v5189_v20 = vld [vmem:[%s7205_s2 + $0xa4] ss:$16 sps:$4 sm:$0xff]  }
   0x8   :  { %1956 = vmatprep.subr.bf16.mxu0 %v5171_v8  ;;  %2211 = vmatprep.subr.bf16.mxu1 %v5173_v9  ;;  %v5191_v21 = vld [vmem:[%s7205_s2 + $0xac] ss:$16 sps:$4 sm:$0xff]   ;;  %v5193_v22 = vld [vmem:[%s7205_s2 + $0xa0] ss:$16 sps:$4 sm:$0xff]   ;;  %v5194_v23 = vld [vmem:[%s7205_s2 + $0xa8] ss:$16 sps:$4 sm:$0xff]  }
   0x9   :  { %v5195_v24 = vld [vmem:[%s7205_s2 + $0xc4] ss:$16 sps:$4 sm:$0xff]   ;;  %v5197_v25 = vld [vmem:[%s7205_s2 + $0xcc] ss:$16 sps:$4 sm:$0xff]   ;;  %v5199_v26 = vld [vmem:[%s7205_s2 + $0xc0] ss:$16 sps:$4 sm:$0xff]  }
   0xa   :  { %v5200_v27 = vld [vmem:[%s7205_s2 + $0xc8] ss:$16 sps:$4 sm:$0xff]   ;;  %v5201_v28 = vld [vmem:[%s7205_s2 + $0xe4] ss:$16 sps:$4 sm:$0xff]   ;;  %v5203_v29 = vld [vmem:[%s7205_s2 + $0xec] ss:$16 sps:$4 sm:$0xff]  }
   0xb   :  { %1957 = vmatpush1.bf16.msra.mxu0 %v5175_v10  ;;  %2212 = vmatpush1.bf16.msra.mxu1 %v5176_v11  ;;  %v5205_v30 = vld [vmem:[%s7205_s2 + $0xe0] ss:$16 sps:$4 sm:$0xff]   ;;  %v5206_v31 = vld [vmem:[%s7205_s2 + $0xe8] ss:$16 sps:$4 sm:$0xff]   ;;  %v5207_v32 = vld [vmem:[%s7205_s2 + $0x104] ss:$16 sps:$4 sm:$0xff]  }
   0xc   :  { %1958 = vmatprep.subr.bf16.mxu0 %v5177_v12  ;;  %2213 = vmatprep.subr.bf16.mxu1 %v5179_v13  ;;  %v5209_v33 = vld [vmem:[%s7205_s2 + $0x10c] ss:$16 sps:$4 sm:$0xff]   ;;  %v5211_v34 = vld [vmem:[%s7205_s2 + $0x100] ss:$16 sps:$4 sm:$0xff]   ;;  %v5212_v35 = vld [vmem:[%s7205_s2 + $0x108] ss:$16 sps:$4 sm:$0xff]  }
   0xd   :  { %v5213_v36 = vld [vmem:[%s7205_s2 + $0x124] ss:$16 sps:$4 sm:$0xff]   ;;  %v5215_v37 = vld [vmem:[%s7205_s2 + $0x12c] ss:$16 sps:$4 sm:$0xff]   ;;  %v5217_v38 = vld [vmem:[%s7205_s2 + $0x120] ss:$16 sps:$4 sm:$0xff]  }
   0xe   :  { %v5218_v39 = vld [vmem:[%s7205_s2 + $0x128] ss:$16 sps:$4 sm:$0xff]   ;;  %v5219_v40 = vld [vmem:[%s7205_s2 + $0x144] ss:$16 sps:$4 sm:$0xff]   ;;  %v5221_v41 = vld [vmem:[%s7205_s2 + $0x14c] ss:$16 sps:$4 sm:$0xff]  }
   0xf   :  { %1959 = vmatpush1.bf16.msra.mxu0 %v5181_v14  ;;  %2214 = vmatpush1.bf16.msra.mxu1 %v5182_v15  ;;  %v5223_v42 = vld [vmem:[%s7205_s2 + $0x140] ss:$16 sps:$4 sm:$0xff]   ;;  %v5224_v43 = vld [vmem:[%s7205_s2 + $0x148] ss:$16 sps:$4 sm:$0xff]   ;;  %v5225_v44 = vld [vmem:[%s7205_s2 + $0x164] ss:$16 sps:$4 sm:$0xff]  }
  0x10   :  { %1960 = vmatprep.subr.bf16.mxu0 %v5183_v16  ;;  %2215 = vmatprep.subr.bf16.mxu1 %v5185_v17  ;;  %v5227_v45 = vld [vmem:[%s7205_s2 + $0x16c] ss:$16 sps:$4 sm:$0xff]   ;;  %v5229_v46 = vld [vmem:[%s7205_s2 + $0x160] ss:$16 sps:$4 sm:$0xff]   ;;  %v5230_v47 = vld [vmem:[%s7205_s2 + $0x168] ss:$16 sps:$4 sm:$0xff]  }
  0x11   :  { %v5257_v48 = vld [vmem:[%s7203_s0 + $0x4] ss:$40 sps:$4 sm:$0xff]   ;;  %v5235_v51 = vld [vmem:[%s7205_s2 + $0x180] ss:$16 sps:$4 sm:$0xff]   ;;  %v5236_v52 = vld [vmem:[%s7205_s2 + $0x188] ss:$16 sps:$4 sm:$0xff]  }
  0x12   :  { %v5231_v49 = vld [vmem:[%s7205_s2 + $0x184] ss:$16 sps:$4 sm:$0xff]   ;;  %v5233_v50 = vld [vmem:[%s7205_s2 + $0x18c] ss:$16 sps:$4 sm:$0xff]   ;;  %1984 = vmatprep.mubr.bf16.mxu0 %v5257_v48  ;;  %2239 = vmatprep.mubr.bf16.mxu1 %v5257_v48  ;;  %v5241_v55 = vld [vmem:[%s7205_s2 + $0x1a0] ss:$16 sps:$4 sm:$0xff]  }
  0x13   :  { %1961 = vmatpush1.bf16.msra.mxu0 %v5187_v18  ;;  %2216 = vmatpush1.bf16.msra.mxu1 %v5188_v19  ;;  %v5237_v53 = vld [vmem:[%s7205_s2 + $0x1a4] ss:$16 sps:$4 sm:$0xff]   ;;  %v5239_v54 = vld [vmem:[%s7205_s2 + $0x1ac] ss:$16 sps:$4 sm:$0xff]   ;;  %v5242_v56 = vld [vmem:[%s7205_s2 + $0x1a8] ss:$16 sps:$4 sm:$0xff]  }
  0x14   :  { %1962 = vmatprep.subr.bf16.mxu0 %v5189_v20  ;;  %2217 = vmatprep.subr.bf16.mxu1 %v5191_v21  ;;  %v5243_v57 = vld [vmem:[%s7205_s2 + $0x1c4] ss:$16 sps:$4 sm:$0xff]   ;;  %v5245_v58 = vld [vmem:[%s7205_s2 + $0x1cc] ss:$16 sps:$4 sm:$0xff]   ;;  %v5247_v59 = vld [vmem:[%s7205_s2 + $0x1c0] ss:$16 sps:$4 sm:$0xff]  }
  0x15   :  { %v5248_v60 = vld [vmem:[%s7205_s2 + $0x1c8] ss:$16 sps:$4 sm:$0xff]   ;;  %v5249_v61 = vld [vmem:[%s7205_s2 + $0x1e4] ss:$16 sps:$4 sm:$0xff]   ;;  %v5251_v62 = vld [vmem:[%s7205_s2 + $0x1ec] ss:$16 sps:$4 sm:$0xff]  }
  0x16   :  { %v5253_v63 = vld [vmem:[%s7205_s2 + $0x1e0] ss:$16 sps:$4 sm:$0xff]   ;;  %v5254_v0 = vld [vmem:[%s7205_s2 + $0x1e8] ss:$16 sps:$4 sm:$0xff]   ;;  %v5260_v1 = vld [vmem:[%s7205_s2 + $0x204] ss:$16 sps:$4 sm:$0xff]  }
  0x17   :  { %1963 = vmatpush1.bf16.msra.mxu0 %v5193_v22  ;;  %2218 = vmatpush1.bf16.msra.mxu1 %v5194_v23  ;;  %v5263_v2 = vld [vmem:[%s7205_s2 + $0x20c] ss:$16 sps:$4 sm:$0xff]   ;;  %v5255_v3 = vld [vmem:[%s7203_s0] ss:$40 sps:$4 sm:$0xff]   ;;  %v5266_v6 = vld [vmem:[%s7205_s2 + $0x224] ss:$16 sps:$4 sm:$0xff]  }
  0x18   :  { %1964 = vmatprep.subr.bf16.mxu0 %v5195_v24  ;;  %2219 = vmatprep.subr.bf16.mxu1 %v5197_v25  ;;  %v5258_v4 = vld [vmem:[%s7205_s2 + $0x200] ss:$16 sps:$4 sm:$0xff]   ;;  %v5261_v5 = vld [vmem:[%s7205_s2 + $0x208] ss:$16 sps:$4 sm:$0xff]   ;;  %v5269_v7 = vld [vmem:[%s7205_s2 + $0x22c] ss:$16 sps:$4 sm:$0xff]  }
  0x19   :  { %v5264_v8 = vld [vmem:[%s7205_s2 + $0x220] ss:$16 sps:$4 sm:$0xff]   ;;  %v5267_v9 = vld [vmem:[%s7205_s2 + $0x228] ss:$16 sps:$4 sm:$0xff]   ;;  %v5272_v10 = vld [vmem:[%s7205_s2 + $0x244] ss:$16 sps:$4 sm:$0xff]  }
  0x1a   :  { %v5275_v11 = vld [vmem:[%s7205_s2 + $0x24c] ss:$16 sps:$4 sm:$0xff]   ;;  %v5270_v12 = vld [vmem:[%s7205_s2 + $0x240] ss:$16 sps:$4 sm:$0xff]   ;;  %v5273_v13 = vld [vmem:[%s7205_s2 + $0x248] ss:$16 sps:$4 sm:$0xff]  }
  0x1b   :  { %1965 = vmatpush1.bf16.msra.mxu0 %v5199_v26  ;;  %2220 = vmatpush1.bf16.msra.mxu1 %v5200_v27  ;;  %v5278_v14 = vld [vmem:[%s7205_s2 + $0x264] ss:$16 sps:$4 sm:$0xff]   ;;  %v5281_v15 = vld [vmem:[%s7205_s2 + $0x26c] ss:$16 sps:$4 sm:$0xff]   ;;  %v5276_v16 = vld [vmem:[%s7205_s2 + $0x260] ss:$16 sps:$4 sm:$0xff]  }
  0x1c   :  { %1966 = vmatprep.subr.bf16.mxu0 %v5201_v28  ;;  %2221 = vmatprep.subr.bf16.mxu1 %v5203_v29  ;;  %v5279_v17 = vld [vmem:[%s7205_s2 + $0x268] ss:$16 sps:$4 sm:$0xff]   ;;  %v5284_v18 = vld [vmem:[%s7205_s2 + $0x284] ss:$16 sps:$4 sm:$0xff]   ;;  %v5287_v19 = vld [vmem:[%s7205_s2 + $0x28c] ss:$16 sps:$4 sm:$0xff]  }
  0x1d   :  { %v5282_v20 = vld [vmem:[%s7205_s2 + $0x280] ss:$16 sps:$4 sm:$0xff]   ;;  %v5285_v21 = vld [vmem:[%s7205_s2 + $0x288] ss:$16 sps:$4 sm:$0xff]   ;;  %v5290_v22 = vld [vmem:[%s7205_s2 + $0x2a4] ss:$16 sps:$4 sm:$0xff]  }
  0x1e   :  { %v5293_v23 = vld [vmem:[%s7205_s2 + $0x2ac] ss:$16 sps:$4 sm:$0xff]   ;;  %v35_v24 = vld [vmem:[%s7203_s0 + $0x50] sm:$0x11]  ;;  %v5291_v28 = vld [vmem:[%s7205_s2 + $0x2a8] ss:$16 sps:$4 sm:$0xff]  }
  0x1f   :  { %1967 = vmatpush1.bf16.msra.mxu0 %v5205_v30  ;;  %2222 = vmatpush1.bf16.msra.mxu1 %v5206_v31  ;;  %v4154_v25 = vcombine.high %v35_v24, %v35_v24  ;;  %v5288_v26 = vld [vmem:[%s7205_s2 + $0x2a0] ss:$16 sps:$4 sm:$0xff]   ;;  %v4153_v27 = vcombine.low %v35_v24, %v35_v24  ;;  %v5296_v29 = vld [vmem:[%s7205_s2 + $0x2c4] ss:$16 sps:$4 sm:$0xff]   ;;  %v5299_v30 = vld [vmem:[%s7205_s2 + $0x2cc] ss:$16 sps:$4 sm:$0xff]  }
  0x20   :  { %1968 = vmatprep.subr.bf16.mxu0 %v5207_v32  ;;  %2223 = vmatprep.subr.bf16.mxu1 %v5209_v33  ;;  %v5294_v31 = vld [vmem:[%s7205_s2 + $0x2c0] ss:$16 sps:$4 sm:$0xff]   ;;  %v5297_v32 = vld [vmem:[%s7205_s2 + $0x2c8] ss:$16 sps:$4 sm:$0xff]   ;;  %v5358_v33 = vld [vmem:[%s7203_s0 + $0xc] ss:$40 sps:$4 sm:$0xff]  }
  0x21   :  { %v5318_v48 = vld [vmem:[%s7205_s2 + $0x340] ss:$16 sps:$4 sm:$0xff]   ;;  %v5459_v24 = vld [vmem:[%s7203_s0 + $0x14] ss:$40 sps:$4 sm:$0xff]  }
  0x23   :  { %1969 = vmatpush1.bf16.msra.mxu0 %v5211_v34  ;;  %2224 = vmatpush1.bf16.msra.mxu1 %v5212_v35  ;;  %v5302_v34 = vld [vmem:[%s7205_s2 + $0x2e4] ss:$16 sps:$4 sm:$0xff]   ;;  %v5305_v35 = vld [vmem:[%s7205_s2 + $0x2ec] ss:$16 sps:$4 sm:$0xff]  }
  0x24   :  { %1970 = vmatprep.subr.bf16.mxu0 %v5213_v36  ;;  %2225 = vmatprep.subr.bf16.mxu1 %v5215_v37  ;;  %v5300_v36 = vld [vmem:[%s7205_s2 + $0x2e0] ss:$16 sps:$4 sm:$0xff]   ;;  %v5303_v37 = vld [vmem:[%s7205_s2 + $0x2e8] ss:$16 sps:$4 sm:$0xff]  }
  0x27   :  { %1971 = vmatpush1.bf16.msra.mxu0 %v5217_v38  ;;  %2226 = vmatpush1.bf16.msra.mxu1 %v5218_v39  ;;  %v5308_v38 = vld [vmem:[%s7205_s2 + $0x304] ss:$16 sps:$4 sm:$0xff]   ;;  %v5311_v39 = vld [vmem:[%s7205_s2 + $0x30c] ss:$16 sps:$4 sm:$0xff]  }
  0x28   :  { %1972 = vmatprep.subr.bf16.mxu0 %v5219_v40  ;;  %2227 = vmatprep.subr.bf16.mxu1 %v5221_v41  ;;  %v5306_v40 = vld [vmem:[%s7205_s2 + $0x300] ss:$16 sps:$4 sm:$0xff]   ;;  %v5309_v41 = vld [vmem:[%s7205_s2 + $0x308] ss:$16 sps:$4 sm:$0xff]  }
  0x2b   :  { %1973 = vmatpush1.bf16.msra.mxu0 %v5223_v42  ;;  %2228 = vmatpush1.bf16.msra.mxu1 %v5224_v43  ;;  %v5314_v42 = vld [vmem:[%s7205_s2 + $0x324] ss:$16 sps:$4 sm:$0xff]   ;;  %v5317_v43 = vld [vmem:[%s7205_s2 + $0x32c] ss:$16 sps:$4 sm:$0xff]  }
  0x2c   :  { %1974 = vmatprep.subr.bf16.mxu0 %v5225_v44  ;;  %2229 = vmatprep.subr.bf16.mxu1 %v5227_v45  ;;  %v5312_v44 = vld [vmem:[%s7205_s2 + $0x320] ss:$16 sps:$4 sm:$0xff]   ;;  %v5315_v45 = vld [vmem:[%s7205_s2 + $0x328] ss:$16 sps:$4 sm:$0xff]  }
  0x2f   :  { %1975 = vmatpush1.bf16.msra.mxu0 %v5229_v46  ;;  %2230 = vmatpush1.bf16.msra.mxu1 %v5230_v47  ;;  %v5320_v46 = vld [vmem:[%s7205_s2 + $0x344] ss:$16 sps:$4 sm:$0xff]   ;;  %v5323_v47 = vld [vmem:[%s7205_s2 + $0x34c] ss:$16 sps:$4 sm:$0xff]  }
  0x30   :  { %1976 = vmatprep.subr.bf16.mxu0 %v5231_v49  ;;  %2231 = vmatprep.subr.bf16.mxu1 %v5233_v50  ;;  %v5321_v49 = vld [vmem:[%s7205_s2 + $0x348] ss:$16 sps:$4 sm:$0xff]   ;;  %v5326_v50 = vld [vmem:[%s7205_s2 + $0x364] ss:$16 sps:$4 sm:$0xff]  }
  0x33   :  { %1977 = vmatpush1.bf16.msra.mxu0 %v5235_v51  ;;  %2232 = vmatpush1.bf16.msra.mxu1 %v5236_v52  ;;  %v5329_v51 = vld [vmem:[%s7205_s2 + $0x36c] ss:$16 sps:$4 sm:$0xff]   ;;  %v5324_v52 = vld [vmem:[%s7205_s2 + $0x360] ss:$16 sps:$4 sm:$0xff]  }
  0x34   :  { %1978 = vmatprep.subr.bf16.mxu0 %v5237_v53  ;;  %2233 = vmatprep.subr.bf16.mxu1 %v5239_v54  ;;  %v5327_v53 = vld [vmem:[%s7205_s2 + $0x368] ss:$16 sps:$4 sm:$0xff]   ;;  %v5332_v54 = vld [vmem:[%s7205_s2 + $0x384] ss:$16 sps:$4 sm:$0xff]  }
  0x37   :  { %1979 = vmatpush1.bf16.msra.mxu0 %v5241_v55  ;;  %2234 = vmatpush1.bf16.msra.mxu1 %v5242_v56  ;;  %v5335_v55 = vld [vmem:[%s7205_s2 + $0x38c] ss:$16 sps:$4 sm:$0xff]   ;;  %v5330_v56 = vld [vmem:[%s7205_s2 + $0x380] ss:$16 sps:$4 sm:$0xff]  }
  0x38   :  { %1980 = vmatprep.subr.bf16.mxu0 %v5243_v57  ;;  %2235 = vmatprep.subr.bf16.mxu1 %v5245_v58  ;;  %v5333_v57 = vld [vmem:[%s7205_s2 + $0x388] ss:$16 sps:$4 sm:$0xff]   ;;  %v5338_v58 = vld [vmem:[%s7205_s2 + $0x3a4] ss:$16 sps:$4 sm:$0xff]  }
  0x3b   :  { %1981 = vmatpush1.bf16.msra.mxu0 %v5247_v59  ;;  %2236 = vmatpush1.bf16.msra.mxu1 %v5248_v60  ;;  %v5341_v59 = vld [vmem:[%s7205_s2 + $0x3ac] ss:$16 sps:$4 sm:$0xff]   ;;  %v5336_v60 = vld [vmem:[%s7205_s2 + $0x3a0] ss:$16 sps:$4 sm:$0xff]  }
  0x3c   :  { %1982 = vmatprep.subr.bf16.mxu0 %v5249_v61  ;;  %2237 = vmatprep.subr.bf16.mxu1 %v5251_v62  ;;  %v5339_v61 = vld [vmem:[%s7205_s2 + $0x3a8] ss:$16 sps:$4 sm:$0xff]   ;;  %v5345_v62 = vld [vmem:[%s7205_s2 + $0x3c4] ss:$16 sps:$4 sm:$0xff]  }
  0x3f   :  { %1983 = vmatpush1.bf16.msra.mxu0 %v5253_v63  ;;  %2238 = vmatpush1.bf16.msra.mxu1 %v5254_v0  ;;  %v5348_v63 = vld [vmem:[%s7205_s2 + $0x3cc] ss:$16 sps:$4 sm:$0xff]   ;;  %v5343_v0 = vld [vmem:[%s7205_s2 + $0x3c0] ss:$16 sps:$4 sm:$0xff]  }
  0x40   :  { %2003 = vmatprep.subr.bf16.mxu0 %v5260_v1  ;;  %2258 = vmatprep.subr.bf16.mxu1 %v5263_v2  ;;  %v5346_v1 = vld [vmem:[%s7205_s2 + $0x3c8] ss:$16 sps:$4 sm:$0xff]   ;;  %v5352_v2 = vld [vmem:[%s7205_s2 + $0x3e4] ss:$16 sps:$4 sm:$0xff]  }
  0x42   :  { %1985 = vmatmul.mubr.bf16.vlgmr.msra.gmra.mrb[0].mxu0 %v5255_v3  ;;  %2240 = vmatmul.mubr.bf16.vlgmr.msra.gmra.mrb[0].mxu1 %v5255_v3  ;;  %v5355_v3 = vld [vmem:[%s7205_s2 + $0x3ec] ss:$16 sps:$4 sm:$0xff]  }
  0x43   :  { %2004 = vmatpush1.bf16.msra.mxu0 %v5258_v4  ;;  %2259 = vmatpush1.bf16.msra.mxu1 %v5261_v5  ;;  %v5350_v4 = vld [vmem:[%s7205_s2 + $0x3e0] ss:$16 sps:$4 sm:$0xff]   ;;  %v5353_v5 = vld [vmem:[%s7205_s2 + $0x3e8] ss:$16 sps:$4 sm:$0xff]  }
  0x44   :  { %2005 = vmatprep.subr.bf16.mxu0 %v5266_v6  ;;  %2260 = vmatprep.subr.bf16.mxu1 %v5269_v7  ;;  %v5361_v6 = vld [vmem:[%s7205_s2 + $0x404] ss:$16 sps:$4 sm:$0xff]   ;;  %v5364_v7 = vld [vmem:[%s7205_s2 + $0x40c] ss:$16 sps:$4 sm:$0xff]  }
  0x45   :  { %1994 = vmatprep.mubr.bf16.mxu0 %v4154_v25  ;;  %2249 = vmatprep.mubr.bf16.mxu1 %v4154_v25  ;;  %v5377_v25 = vld [vmem:[%s7205_s2 + $0x460] ss:$16 sps:$4 sm:$0xff]  }
  0x47   :  { %2006 = vmatpush1.bf16.msra.mxu0 %v5264_v8  ;;  %2261 = vmatpush1.bf16.msra.mxu1 %v5267_v9  ;;  %v5356_v8 = vld [vmem:[%s7203_s0 + $0x8] ss:$40 sps:$4 sm:$0xff]   ;;  %v36_v9 = vld [vmem:[%s7203_s0 + $0x58] sm:$0x11] }
  0x48   :  { %2007 = vmatprep.subr.bf16.mxu0 %v5272_v10  ;;  %2262 = vmatprep.subr.bf16.mxu1 %v5275_v11  ;;  %v5359_v10 = vld [vmem:[%s7205_s2 + $0x400] ss:$16 sps:$4 sm:$0xff]   ;;  %v5362_v11 = vld [vmem:[%s7205_s2 + $0x408] ss:$16 sps:$4 sm:$0xff]  }
  0x4a   :  { %1995 = vmatmul.mubr.bf16.gmra.mrb[4].mxu0 %v4153_v27  ;;  %2250 = vmatmul.mubr.bf16.gmra.mrb[4].mxu1 %v4153_v27  ;;  %v5385_v27 = vld [vmem:[%s7205_s2 + $0x484] ss:$16 sps:$4 sm:$0xff]  }
  0x4b   :  { %2008 = vmatpush1.bf16.msra.mxu0 %v5270_v12  ;;  %2263 = vmatpush1.bf16.msra.mxu1 %v5273_v13  ;;  %v5367_v12 = vld [vmem:[%s7205_s2 + $0x424] ss:$16 sps:$4 sm:$0xff]   ;;  %v5370_v13 = vld [vmem:[%s7205_s2 + $0x42c] ss:$16 sps:$4 sm:$0xff]  }
  0x4c   :  { %2009 = vmatprep.subr.bf16.mxu0 %v5278_v14  ;;  %2264 = vmatprep.subr.bf16.mxu1 %v5281_v15  ;;  %v4156_v14 = vcombine.high %v36_v9, %v36_v9  ;;  %v5365_v15 = vld [vmem:[%s7205_s2 + $0x420] ss:$16 sps:$4 sm:$0xff]  }
  0x4d   :  { %2035 = vmatprep.mubr.bf16.mxu0 %v5358_v33  ;;  %2290 = vmatprep.mubr.bf16.mxu1 %v5358_v33  ;;  %v5389_v33 = vld [vmem:[%s7205_s2 + $0x4a0] ss:$16 sps:$4 sm:$0xff]  }
  0x4f   :  { %2010 = vmatpush1.bf16.msra.mxu0 %v5276_v16  ;;  %2265 = vmatpush1.bf16.msra.mxu1 %v5279_v17  ;;  %v5368_v16 = vld [vmem:[%s7205_s2 + $0x428] ss:$16 sps:$4 sm:$0xff]   ;;  %v5373_v17 = vld [vmem:[%s7205_s2 + $0x444] ss:$16 sps:$4 sm:$0xff]  }
  0x50   :  { %2011 = vmatprep.subr.bf16.mxu0 %v5284_v18  ;;  %2266 = vmatprep.subr.bf16.mxu1 %v5287_v19  ;;  %v5376_v18 = vld [vmem:[%s7205_s2 + $0x44c] ss:$16 sps:$4 sm:$0xff]   ;;  %v4155_v19 = vcombine.low %v36_v9, %v36_v9  ;;  %v5451_v9 = vld [vmem:[%s7205_s2 + $0x5e0] ss:$16 sps:$4 sm:$0xff]  }
  0x53   :  { %2012 = vmatpush1.bf16.msra.mxu0 %v5282_v20  ;;  %2267 = vmatpush1.bf16.msra.mxu1 %v5285_v21  ;;  %v5371_v20 = vld [vmem:[%s7205_s2 + $0x440] ss:$16 sps:$4 sm:$0xff]   ;;  %v5374_v21 = vld [vmem:[%s7205_s2 + $0x448] ss:$16 sps:$4 sm:$0xff]  }
  0x54   :  { %2013 = vmatprep.subr.bf16.mxu0 %v5290_v22  ;;  %2268 = vmatprep.subr.bf16.mxu1 %v5293_v23  ;;  %v5379_v22 = vld [vmem:[%s7205_s2 + $0x464] ss:$16 sps:$4 sm:$0xff]   ;;  %v5382_v23 = vld [vmem:[%s7205_s2 + $0x46c] ss:$16 sps:$4 sm:$0xff]  }
  0x57   :  { %2014 = vmatpush1.bf16.msra.mxu0 %v5288_v26  ;;  %2269 = vmatpush1.bf16.msra.mxu1 %v5291_v28  ;;  %v5380_v26 = vld [vmem:[%s7205_s2 + $0x468] ss:$16 sps:$4 sm:$0xff]   ;;  %v5388_v28 = vld [vmem:[%s7205_s2 + $0x48c] ss:$16 sps:$4 sm:$0xff]  }
  0x58   :  { %2015 = vmatprep.subr.bf16.mxu0 %v5296_v29  ;;  %2270 = vmatprep.subr.bf16.mxu1 %v5299_v30  ;;  %v5383_v29 = vld [vmem:[%s7205_s2 + $0x480] ss:$16 sps:$4 sm:$0xff]   ;;  %v5386_v30 = vld [vmem:[%s7205_s2 + $0x488] ss:$16 sps:$4 sm:$0xff]  }
  0x5b   :  { %2016 = vmatpush1.bf16.msra.mxu0 %v5294_v31  ;;  %2271 = vmatpush1.bf16.msra.mxu1 %v5297_v32  ;;  %v5391_v31 = vld [vmem:[%s7205_s2 + $0x4a4] ss:$16 sps:$4 sm:$0xff]   ;;  %v5394_v32 = vld [vmem:[%s7205_s2 + $0x4ac] ss:$16 sps:$4 sm:$0xff]  }
  0x5c   :  { %2017 = vmatprep.subr.bf16.mxu0 %v5302_v34  ;;  %2272 = vmatprep.subr.bf16.mxu1 %v5305_v35  ;;  %v5392_v34 = vld [vmem:[%s7205_s2 + $0x4a8] ss:$16 sps:$4 sm:$0xff]   ;;  %v5397_v35 = vld [vmem:[%s7205_s2 + $0x4c4] ss:$16 sps:$4 sm:$0xff]  }
  0x5f   :  { %2018 = vmatpush1.bf16.msra.mxu0 %v5300_v36  ;;  %2273 = vmatpush1.bf16.msra.mxu1 %v5303_v37  ;;  %v5400_v36 = vld [vmem:[%s7205_s2 + $0x4cc] ss:$16 sps:$4 sm:$0xff]   ;;  %v5395_v37 = vld [vmem:[%s7205_s2 + $0x4c0] ss:$16 sps:$4 sm:$0xff]  }
  0x60   :  { %2019 = vmatprep.subr.bf16.mxu0 %v5308_v38  ;;  %2274 = vmatprep.subr.bf16.mxu1 %v5311_v39  ;;  %v5398_v38 = vld [vmem:[%s7205_s2 + $0x4c8] ss:$16 sps:$4 sm:$0xff]   ;;  %v5403_v39 = vld [vmem:[%s7205_s2 + $0x4e4] ss:$16 sps:$4 sm:$0xff]  }
  0x63   :  { %2020 = vmatpush1.bf16.msra.mxu0 %v5306_v40  ;;  %2275 = vmatpush1.bf16.msra.mxu1 %v5309_v41  ;;  %v5406_v40 = vld [vmem:[%s7205_s2 + $0x4ec] ss:$16 sps:$4 sm:$0xff]   ;;  %v5401_v41 = vld [vmem:[%s7205_s2 + $0x4e0] ss:$16 sps:$4 sm:$0xff]  }
  0x64   :  { %2021 = vmatprep.subr.bf16.mxu0 %v5314_v42  ;;  %2276 = vmatprep.subr.bf16.mxu1 %v5317_v43  ;;  %v5404_v42 = vld [vmem:[%s7205_s2 + $0x4e8] ss:$16 sps:$4 sm:$0xff]   ;;  %v5409_v43 = vld [vmem:[%s7205_s2 + $0x504] ss:$16 sps:$4 sm:$0xff]  }
  0x67   :  { %2022 = vmatpush1.bf16.msra.mxu0 %v5312_v44  ;;  %2277 = vmatpush1.bf16.msra.mxu1 %v5315_v45  ;;  %v5412_v44 = vld [vmem:[%s7205_s2 + $0x50c] ss:$16 sps:$4 sm:$0xff]   ;;  %v5407_v45 = vld [vmem:[%s7205_s2 + $0x500] ss:$16 sps:$4 sm:$0xff]  }
  0x68   :  { %2023 = vmatprep.subr.bf16.mxu0 %v5320_v46  ;;  %2278 = vmatprep.subr.bf16.mxu1 %v5323_v47  ;;  %v5410_v46 = vld [vmem:[%s7205_s2 + $0x508] ss:$16 sps:$4 sm:$0xff]   ;;  %v5415_v47 = vld [vmem:[%s7205_s2 + $0x524] ss:$16 sps:$4 sm:$0xff]  }
  0x6b   :  { %2024 = vmatpush1.bf16.msra.mxu0 %v5318_v48  ;;  %2279 = vmatpush1.bf16.msra.mxu1 %v5321_v49  ;;  %v5418_v48 = vld [vmem:[%s7205_s2 + $0x52c] ss:$16 sps:$4 sm:$0xff]   ;;  %v5413_v49 = vld [vmem:[%s7205_s2 + $0x520] ss:$16 sps:$4 sm:$0xff]  }
  0x6c   :  { %2025 = vmatprep.subr.bf16.mxu0 %v5326_v50  ;;  %2280 = vmatprep.subr.bf16.mxu1 %v5329_v51  ;;  %v5416_v50 = vld [vmem:[%s7205_s2 + $0x528] ss:$16 sps:$4 sm:$0xff]   ;;  %v5421_v51 = vld [vmem:[%s7205_s2 + $0x544] ss:$16 sps:$4 sm:$0xff]  }
  0x6f   :  { %2026 = vmatpush1.bf16.msra.mxu0 %v5324_v52  ;;  %2281 = vmatpush1.bf16.msra.mxu1 %v5327_v53  ;;  %v5424_v52 = vld [vmem:[%s7205_s2 + $0x54c] ss:$16 sps:$4 sm:$0xff]   ;;  %v5419_v53 = vld [vmem:[%s7205_s2 + $0x540] ss:$16 sps:$4 sm:$0xff]  }
  0x70   :  { %2027 = vmatprep.subr.bf16.mxu0 %v5332_v54  ;;  %2282 = vmatprep.subr.bf16.mxu1 %v5335_v55  ;;  %v5422_v54 = vld [vmem:[%s7205_s2 + $0x548] ss:$16 sps:$4 sm:$0xff]   ;;  %v5427_v55 = vld [vmem:[%s7205_s2 + $0x564] ss:$16 sps:$4 sm:$0xff]  }
  0x73   :  { %2028 = vmatpush1.bf16.msra.mxu0 %v5330_v56  ;;  %2283 = vmatpush1.bf16.msra.mxu1 %v5333_v57  ;;  %v5430_v56 = vld [vmem:[%s7205_s2 + $0x56c] ss:$16 sps:$4 sm:$0xff]   ;;  %v5425_v57 = vld [vmem:[%s7205_s2 + $0x560] ss:$16 sps:$4 sm:$0xff]  }
  0x74   :  { %2029 = vmatprep.subr.bf16.mxu0 %v5338_v58  ;;  %2284 = vmatprep.subr.bf16.mxu1 %v5341_v59  ;;  %v5428_v58 = vld [vmem:[%s7205_s2 + $0x568] ss:$16 sps:$4 sm:$0xff]   ;;  %v5433_v59 = vld [vmem:[%s7205_s2 + $0x584] ss:$16 sps:$4 sm:$0xff]  }
  0x77   :  { %2030 = vmatpush1.bf16.msra.mxu0 %v5336_v60  ;;  %2285 = vmatpush1.bf16.msra.mxu1 %v5339_v61  ;;  %v5436_v60 = vld [vmem:[%s7205_s2 + $0x58c] ss:$16 sps:$4 sm:$0xff]   ;;  %v5431_v61 = vld [vmem:[%s7205_s2 + $0x580] ss:$16 sps:$4 sm:$0xff]  }
  0x78   :  { %2031 = vmatprep.subr.bf16.mxu0 %v5345_v62  ;;  %2286 = vmatprep.subr.bf16.mxu1 %v5348_v63  ;;  %v5434_v62 = vld [vmem:[%s7205_s2 + $0x588] ss:$16 sps:$4 sm:$0xff]   ;;  %v5439_v63 = vld [vmem:[%s7205_s2 + $0x5a4] ss:$16 sps:$4 sm:$0xff]  }
  0x7b   :  { %2032 = vmatpush1.bf16.msra.mxu0 %v5343_v0  ;;  %2287 = vmatpush1.bf16.msra.mxu1 %v5346_v1  ;;  %v5442_v0 = vld [vmem:[%s7205_s2 + $0x5ac] ss:$16 sps:$4 sm:$0xff]   ;;  %v5437_v1 = vld [vmem:[%s7205_s2 + $0x5a0] ss:$16 sps:$4 sm:$0xff]  }
  0x7c   :  { %2033 = vmatprep.subr.bf16.mxu0 %v5352_v2  ;;  %2288 = vmatprep.subr.bf16.mxu1 %v5355_v3  ;;  %v5440_v2 = vld [vmem:[%s7205_s2 + $0x5a8] ss:$16 sps:$4 sm:$0xff]   ;;  %v5446_v3 = vld [vmem:[%s7205_s2 + $0x5c4] ss:$16 sps:$4 sm:$0xff]  }
  0x7f   :  { %2034 = vmatpush1.bf16.msra.mxu0 %v5350_v4  ;;  %2289 = vmatpush1.bf16.msra.mxu1 %v5353_v5  ;;  %v5449_v4 = vld [vmem:[%s7205_s2 + $0x5cc] ss:$16 sps:$4 sm:$0xff]   ;;  %v5444_v5 = vld [vmem:[%s7205_s2 + $0x5c0] ss:$16 sps:$4 sm:$0xff]  }
  0x80   :  { %2054 = vmatprep.subr.bf16.mxu0 %v5361_v6  ;;  %2309 = vmatprep.subr.bf16.mxu1 %v5364_v7  ;;  %v5447_v6 = vld [vmem:[%s7205_s2 + $0x5c8] ss:$16 sps:$4 sm:$0xff]   ;;  %v5453_v7 = vld [vmem:[%s7205_s2 + $0x5e4] ss:$16 sps:$4 sm:$0xff]  }
  0x82   :  { %2036 = vmatmul.mubr.bf16.vlgmr.msra.gmra.mrb[0].mxu0 %v5356_v8  ;;  %2291 = vmatmul.mubr.bf16.vlgmr.msra.gmra.mrb[0].mxu1 %v5356_v8  ;;  %v5456_v8 = vld [vmem:[%s7205_s2 + $0x5ec] ss:$16 sps:$4 sm:$0xff]  }
  0x83   :  { %2055 = vmatpush1.bf16.msra.mxu0 %v5359_v10  ;;  %2310 = vmatpush1.bf16.msra.mxu1 %v5362_v11  ;;  %v5454_v10 = vld [vmem:[%s7205_s2 + $0x5e8] ss:$16 sps:$4 sm:$0xff]   ;;  %v5462_v11 = vld [vmem:[%s7205_s2 + $0x604] ss:$16 sps:$4 sm:$0xff]  }
  0x84   :  { %2056 = vmatprep.subr.bf16.mxu0 %v5367_v12  ;;  %2311 = vmatprep.subr.bf16.mxu1 %v5370_v13  ;;  %v5465_v12 = vld [vmem:[%s7205_s2 + $0x60c] ss:$16 sps:$4 sm:$0xff]   ;;  %v5457_v13 = vld [vmem:[%s7203_s0 + $0x10] ss:$40 sps:$4 sm:$0xff]  }
  0x85   :  { %2045 = vmatprep.mubr.bf16.mxu0 %v4156_v14  ;;  %2300 = vmatprep.mubr.bf16.mxu1 %v4156_v14  ;;  %v5460_v14 = vld [vmem:[%s7205_s2 + $0x600] ss:$16 sps:$4 sm:$0xff]  }
  0x87   :  { %2057 = vmatpush1.bf16.msra.mxu0 %v5365_v15  ;;  %2312 = vmatpush1.bf16.msra.mxu1 %v5368_v16  ;;  %v37_v15 = vld [vmem:[%s7203_s0 + $0x60] sm:$0x11]  ;;  %v5463_v16 = vld [vmem:[%s7205_s2 + $0x608] ss:$16 sps:$4 sm:$0xff]  }
  0x88   :  { %2058 = vmatprep.subr.bf16.mxu0 %v5373_v17  ;;  %2313 = vmatprep.subr.bf16.mxu1 %v5376_v18  ;;  %v5468_v17 = vld [vmem:[%s7205_s2 + $0x624] ss:$16 sps:$4 sm:$0xff]   ;;  %v5471_v18 = vld [vmem:[%s7205_s2 + $0x62c] ss:$16 sps:$4 sm:$0xff]  }
  0x8a   :  { %2046 = vmatmul.mubr.bf16.gmra.mrb[4].mxu0 %v4155_v19  ;;  %2301 = vmatmul.mubr.bf16.gmra.mrb[4].mxu1 %v4155_v19  ;;  %v4158_v19 = vcombine.high %v37_v15, %v37_v15 }
  0x8b   :  { %2059 = vmatpush1.bf16.msra.mxu0 %v5371_v20  ;;  %2314 = vmatpush1.bf16.msra.mxu1 %v5374_v21  ;;  %v5466_v20 = vld [vmem:[%s7205_s2 + $0x620] ss:$16 sps:$4 sm:$0xff]   ;;  %v5469_v21 = vld [vmem:[%s7205_s2 + $0x628] ss:$16 sps:$4 sm:$0xff]  }
  0x8c   :  { %2060 = vmatprep.subr.bf16.mxu0 %v5379_v22  ;;  %2315 = vmatprep.subr.bf16.mxu1 %v5382_v23  ;;  %v5474_v22 = vld [vmem:[%s7205_s2 + $0x644] ss:$16 sps:$4 sm:$0xff]   ;;  %v5477_v23 = vld [vmem:[%s7205_s2 + $0x64c] ss:$16 sps:$4 sm:$0xff]  }
  0x8d   :  { %2086 = vmatprep.mubr.bf16.mxu0 %v5459_v24  ;;  %2341 = vmatprep.mubr.bf16.mxu1 %v5459_v24  ;;  %v5472_v24 = vld [vmem:[%s7205_s2 + $0x640] ss:$16 sps:$4 sm:$0xff]  }
  0x8f   :  { %2061 = vmatpush1.bf16.msra.mxu0 %v5377_v25  ;;  %2316 = vmatpush1.bf16.msra.mxu1 %v5380_v26  ;;  %v4157_v25 = vcombine.low %v37_v15, %v37_v15  ;;  %v5475_v26 = vld [vmem:[%s7205_s2 + $0x648] ss:$16 sps:$4 sm:$0xff]  }
  0x90   :  { %2062 = vmatprep.subr.bf16.mxu0 %v5385_v27  ;;  %2317 = vmatprep.subr.bf16.mxu1 %v5388_v28  ;;  %v5480_v27 = vld [vmem:[%s7205_s2 + $0x664] ss:$16 sps:$4 sm:$0xff]   ;;  %v5483_v28 = vld [vmem:[%s7205_s2 + $0x66c] ss:$16 sps:$4 sm:$0xff]  }
  0x93   :  { %2063 = vmatpush1.bf16.msra.mxu0 %v5383_v29  ;;  %2318 = vmatpush1.bf16.msra.mxu1 %v5386_v30  ;;  %v5560_v29 = vld [vmem:[%s7203_s0 + $0x1c] ss:$40 sps:$4 sm:$0xff]   ;;  %v5478_v30 = vld [vmem:[%s7205_s2 + $0x660] ss:$16 sps:$4 sm:$0xff]  }
  0x94   :  { %2064 = vmatprep.subr.bf16.mxu0 %v5391_v31  ;;  %2319 = vmatprep.subr.bf16.mxu1 %v5394_v32  ;;  %v5481_v31 = vld [vmem:[%s7205_s2 + $0x668] ss:$16 sps:$4 sm:$0xff]   ;;  %v5486_v32 = vld [vmem:[%s7205_s2 + $0x684] ss:$16 sps:$4 sm:$0xff]  }
  0x97   :  { %2065 = vmatpush1.bf16.msra.mxu0 %v5389_v33  ;;  %2320 = vmatpush1.bf16.msra.mxu1 %v5392_v34  ;;  %v5489_v33 = vld [vmem:[%s7205_s2 + $0x68c] ss:$16 sps:$4 sm:$0xff]   ;;  %v5484_v34 = vld [vmem:[%s7205_s2 + $0x680] ss:$16 sps:$4 sm:$0xff]  }
  0x98   :  { %2066 = vmatprep.subr.bf16.mxu0 %v5397_v35  ;;  %2321 = vmatprep.subr.bf16.mxu1 %v5400_v36  ;;  %v5487_v35 = vld [vmem:[%s7205_s2 + $0x688] ss:$16 sps:$4 sm:$0xff]   ;;  %v5492_v36 = vld [vmem:[%s7205_s2 + $0x6a4] ss:$16 sps:$4 sm:$0xff]  }
  0x9b   :  { %2067 = vmatpush1.bf16.msra.mxu0 %v5395_v37  ;;  %2322 = vmatpush1.bf16.msra.mxu1 %v5398_v38  ;;  %v5495_v37 = vld [vmem:[%s7205_s2 + $0x6ac] ss:$16 sps:$4 sm:$0xff]   ;;  %v5490_v38 = vld [vmem:[%s7205_s2 + $0x6a0] ss:$16 sps:$4 sm:$0xff]  }
  0x9c   :  { %2068 = vmatprep.subr.bf16.mxu0 %v5403_v39  ;;  %2323 = vmatprep.subr.bf16.mxu1 %v5406_v40  ;;  %v5493_v39 = vld [vmem:[%s7205_s2 + $0x6a8] ss:$16 sps:$4 sm:$0xff]   ;;  %v5498_v40 = vld [vmem:[%s7205_s2 + $0x6c4] ss:$16 sps:$4 sm:$0xff]  }
  0x9f   :  { %2069 = vmatpush1.bf16.msra.mxu0 %v5401_v41  ;;  %2324 = vmatpush1.bf16.msra.mxu1 %v5404_v42  ;;  %v5501_v41 = vld [vmem:[%s7205_s2 + $0x6cc] ss:$16 sps:$4 sm:$0xff]   ;;  %v5496_v42 = vld [vmem:[%s7205_s2 + $0x6c0] ss:$16 sps:$4 sm:$0xff]  }
  0xa0   :  { %2070 = vmatprep.subr.bf16.mxu0 %v5409_v43  ;;  %2325 = vmatprep.subr.bf16.mxu1 %v5412_v44  ;;  %v5499_v43 = vld [vmem:[%s7205_s2 + $0x6c8] ss:$16 sps:$4 sm:$0xff]   ;;  %v5504_v44 = vld [vmem:[%s7205_s2 + $0x6e4] ss:$16 sps:$4 sm:$0xff]  }
  0xa3   :  { %2071 = vmatpush1.bf16.msra.mxu0 %v5407_v45  ;;  %2326 = vmatpush1.bf16.msra.mxu1 %v5410_v46  ;;  %v5507_v45 = vld [vmem:[%s7205_s2 + $0x6ec] ss:$16 sps:$4 sm:$0xff]   ;;  %v5502_v46 = vld [vmem:[%s7205_s2 + $0x6e0] ss:$16 sps:$4 sm:$0xff]  }
  0xa4   :  { %2072 = vmatprep.subr.bf16.mxu0 %v5415_v47  ;;  %2327 = vmatprep.subr.bf16.mxu1 %v5418_v48  ;;  %v5505_v47 = vld [vmem:[%s7205_s2 + $0x6e8] ss:$16 sps:$4 sm:$0xff]   ;;  %v5510_v48 = vld [vmem:[%s7205_s2 + $0x704] ss:$16 sps:$4 sm:$0xff]  }
  0xa7   :  { %2073 = vmatpush1.bf16.msra.mxu0 %v5413_v49  ;;  %2328 = vmatpush1.bf16.msra.mxu1 %v5416_v50  ;;  %v5513_v49 = vld [vmem:[%s7205_s2 + $0x70c] ss:$16 sps:$4 sm:$0xff]   ;;  %v5508_v50 = vld [vmem:[%s7205_s2 + $0x700] ss:$16 sps:$4 sm:$0xff]  }
  0xa8   :  { %2074 = vmatprep.subr.bf16.mxu0 %v5421_v51  ;;  %2329 = vmatprep.subr.bf16.mxu1 %v5424_v52  ;;  %v5511_v51 = vld [vmem:[%s7205_s2 + $0x708] ss:$16 sps:$4 sm:$0xff]   ;;  %v5516_v52 = vld [vmem:[%s7205_s2 + $0x724] ss:$16 sps:$4 sm:$0xff]  }
  0xab   :  { %2075 = vmatpush1.bf16.msra.mxu0 %v5419_v53  ;;  %2330 = vmatpush1.bf16.msra.mxu1 %v5422_v54  ;;  %v5519_v53 = vld [vmem:[%s7205_s2 + $0x72c] ss:$16 sps:$4 sm:$0xff]   ;;  %v5514_v54 = vld [vmem:[%s7205_s2 + $0x720] ss:$16 sps:$4 sm:$0xff]  }
  0xac   :  { %2076 = vmatprep.subr.bf16.mxu0 %v5427_v55  ;;  %2331 = vmatprep.subr.bf16.mxu1 %v5430_v56  ;;  %v5517_v55 = vld [vmem:[%s7205_s2 + $0x728] ss:$16 sps:$4 sm:$0xff]   ;;  %v5522_v56 = vld [vmem:[%s7205_s2 + $0x744] ss:$16 sps:$4 sm:$0xff]  }
  0xaf   :  { %2077 = vmatpush1.bf16.msra.mxu0 %v5425_v57  ;;  %2332 = vmatpush1.bf16.msra.mxu1 %v5428_v58  ;;  %v5525_v57 = vld [vmem:[%s7205_s2 + $0x74c] ss:$16 sps:$4 sm:$0xff]   ;;  %v5520_v58 = vld [vmem:[%s7205_s2 + $0x740] ss:$16 sps:$4 sm:$0xff]  }
  0xb0   :  { %2078 = vmatprep.subr.bf16.mxu0 %v5433_v59  ;;  %2333 = vmatprep.subr.bf16.mxu1 %v5436_v60  ;;  %v5523_v59 = vld [vmem:[%s7205_s2 + $0x748] ss:$16 sps:$4 sm:$0xff]   ;;  %v5528_v60 = vld [vmem:[%s7205_s2 + $0x764] ss:$16 sps:$4 sm:$0xff]  }
  0xb3   :  { %2079 = vmatpush1.bf16.msra.mxu0 %v5431_v61  ;;  %2334 = vmatpush1.bf16.msra.mxu1 %v5434_v62  ;;  %v5531_v61 = vld [vmem:[%s7205_s2 + $0x76c] ss:$16 sps:$4 sm:$0xff]   ;;  %v5526_v62 = vld [vmem:[%s7205_s2 + $0x760] ss:$16 sps:$4 sm:$0xff]  }
  0xb4   :  { %2080 = vmatprep.subr.bf16.mxu0 %v5439_v63  ;;  %2335 = vmatprep.subr.bf16.mxu1 %v5442_v0  ;;  %v5529_v63 = vld [vmem:[%s7205_s2 + $0x768] ss:$16 sps:$4 sm:$0xff]   ;;  %v5534_v0 = vld [vmem:[%s7205_s2 + $0x784] ss:$16 sps:$4 sm:$0xff]  }
  0xb7   :  { %2081 = vmatpush1.bf16.msra.mxu0 %v5437_v1  ;;  %2336 = vmatpush1.bf16.msra.mxu1 %v5440_v2  ;;  %v5537_v1 = vld [vmem:[%s7205_s2 + $0x78c] ss:$16 sps:$4 sm:$0xff]   ;;  %v5532_v2 = vld [vmem:[%s7205_s2 + $0x780] ss:$16 sps:$4 sm:$0xff]  }
  0xb8   :  { %2082 = vmatprep.subr.bf16.mxu0 %v5446_v3  ;;  %2337 = vmatprep.subr.bf16.mxu1 %v5449_v4  ;;  %v5535_v3 = vld [vmem:[%s7205_s2 + $0x788] ss:$16 sps:$4 sm:$0xff]   ;;  %v5540_v4 = vld [vmem:[%s7205_s2 + $0x7a4] ss:$16 sps:$4 sm:$0xff]  }
  0xbb   :  { %2083 = vmatpush1.bf16.msra.mxu0 %v5444_v5  ;;  %2338 = vmatpush1.bf16.msra.mxu1 %v5447_v6  ;;  %v5543_v5 = vld [vmem:[%s7205_s2 + $0x7ac] ss:$16 sps:$4 sm:$0xff]   ;;  %v5538_v6 = vld [vmem:[%s7205_s2 + $0x7a0] ss:$16 sps:$4 sm:$0xff]  }
  0xbc   :  { %2084 = vmatprep.subr.bf16.mxu0 %v5453_v7  ;;  %2339 = vmatprep.subr.bf16.mxu1 %v5456_v8  ;;  %v5541_v7 = vld [vmem:[%s7205_s2 + $0x7a8] ss:$16 sps:$4 sm:$0xff]   ;;  %v5547_v8 = vld [vmem:[%s7205_s2 + $0x7c4] ss:$16 sps:$4 sm:$0xff]  }
  0xbf   :  { %2085 = vmatpush1.bf16.msra.mxu0 %v5451_v9  ;;  %2340 = vmatpush1.bf16.msra.mxu1 %v5454_v10  ;;  %v5550_v9 = vld [vmem:[%s7205_s2 + $0x7cc] ss:$16 sps:$4 sm:$0xff]  }
  0xc0   :  { %2105 = vmatprep.subr.bf16.mxu0 %v5462_v11  ;;  %2360 = vmatprep.subr.bf16.mxu1 %v5465_v12 }
  0xc2   :  { %2087 = vmatmul.mubr.bf16.vlgmr.msra.gmra.mrb[0].mxu0 %v5457_v13  ;;  %2342 = vmatmul.mubr.bf16.vlgmr.msra.gmra.mrb[0].mxu1 %v5457_v13 }
  0xc3   :  { %2106 = vmatpush1.bf16.msra.mxu0 %v5460_v14  ;;  %2361 = vmatpush1.bf16.msra.mxu1 %v5463_v16 }
  0xc4   :  { %2107 = vmatprep.subr.bf16.mxu0 %v5468_v17  ;;  %2362 = vmatprep.subr.bf16.mxu1 %v5471_v18 }
  0xc5   :  { %2096 = vmatprep.mubr.bf16.mxu0 %v4158_v19  ;;  %2351 = vmatprep.mubr.bf16.mxu1 %v4158_v19 }
  0xc7   :  { %2108 = vmatpush1.bf16.msra.mxu0 %v5466_v20  ;;  %2363 = vmatpush1.bf16.msra.mxu1 %v5469_v21 }
  0xc8   :  { %2109 = vmatprep.subr.bf16.mxu0 %v5474_v22  ;;  %2364 = vmatprep.subr.bf16.mxu1 %v5477_v23 }
  0xca   :  { %2097 = vmatmul.mubr.bf16.gmra.mrb[4].mxu0 %v4157_v25  ;;  %2352 = vmatmul.mubr.bf16.gmra.mrb[4].mxu1 %v4157_v25 }
  0xcb   :  { %2110 = vmatpush1.bf16.msra.mxu0 %v5472_v24  ;;  %2365 = vmatpush1.bf16.msra.mxu1 %v5475_v26 }
  0xcc   :  { %2111 = vmatprep.subr.bf16.mxu0 %v5480_v27  ;;  %2366 = vmatprep.subr.bf16.mxu1 %v5483_v28 }
  0xcd   :  { %2137 = vmatprep.mubr.bf16.mxu0 %v5560_v29  ;;  %2392 = vmatprep.mubr.bf16.mxu1 %v5560_v29 }
  0xcf   :  { %2112 = vmatpush1.bf16.msra.mxu0 %v5478_v30  ;;  %2367 = vmatpush1.bf16.msra.mxu1 %v5481_v31 }
  0xd0   :  { %2113 = vmatprep.subr.bf16.mxu0 %v5486_v32  ;;  %2368 = vmatprep.subr.bf16.mxu1 %v5489_v33 }
  0xd3   :  { %2114 = vmatpush1.bf16.msra.mxu0 %v5484_v34  ;;  %2369 = vmatpush1.bf16.msra.mxu1 %v5487_v35 }
  0xd4   :  { %2115 = vmatprep.subr.bf16.mxu0 %v5492_v36  ;;  %2370 = vmatprep.subr.bf16.mxu1 %v5495_v37 }
  0xd7   :  { %2116 = vmatpush1.bf16.msra.mxu0 %v5490_v38  ;;  %2371 = vmatpush1.bf16.msra.mxu1 %v5493_v39 }
  0xd8   :  { %2117 = vmatprep.subr.bf16.mxu0 %v5498_v40  ;;  %2372 = vmatprep.subr.bf16.mxu1 %v5501_v41 }
  0xdb   :  { %2118 = vmatpush1.bf16.msra.mxu0 %v5496_v42  ;;  %2373 = vmatpush1.bf16.msra.mxu1 %v5499_v43 }
  0xdc   :  { %2119 = vmatprep.subr.bf16.mxu0 %v5504_v44  ;;  %2374 = vmatprep.subr.bf16.mxu1 %v5507_v45 }
  0xdf   :  { %2120 = vmatpush1.bf16.msra.mxu0 %v5502_v46  ;;  %2375 = vmatpush1.bf16.msra.mxu1 %v5505_v47 }
  0xe0   :  { %2121 = vmatprep.subr.bf16.mxu0 %v5510_v48  ;;  %2376 = vmatprep.subr.bf16.mxu1 %v5513_v49 }
  0xe3   :  { %2122 = vmatpush1.bf16.msra.mxu0 %v5508_v50  ;;  %2377 = vmatpush1.bf16.msra.mxu1 %v5511_v51 }
  0xe4   :  { %2123 = vmatprep.subr.bf16.mxu0 %v5516_v52  ;;  %2378 = vmatprep.subr.bf16.mxu1 %v5519_v53 }
  0xe7   :  { %2124 = vmatpush1.bf16.msra.mxu0 %v5514_v54  ;;  %2379 = vmatpush1.bf16.msra.mxu1 %v5517_v55 }
  0xe8   :  { %2125 = vmatprep.subr.bf16.mxu0 %v5522_v56  ;;  %2380 = vmatprep.subr.bf16.mxu1 %v5525_v57 }
  0xeb   :  { %2126 = vmatpush1.bf16.msra.mxu0 %v5520_v58  ;;  %2381 = vmatpush1.bf16.msra.mxu1 %v5523_v59 }
  0xec   :  { %2127 = vmatprep.subr.bf16.mxu0 %v5528_v60  ;;  %2382 = vmatprep.subr.bf16.mxu1 %v5531_v61 }
  0xef   :  { %2128 = vmatpush1.bf16.msra.mxu0 %v5526_v62  ;;  %2383 = vmatpush1.bf16.msra.mxu1 %v5529_v63 }
  0xf0   :  { %2129 = vmatprep.subr.bf16.mxu0 %v5534_v0  ;;  %2384 = vmatprep.subr.bf16.mxu1 %v5537_v1 }
  0xf3   :  { %2130 = vmatpush1.bf16.msra.mxu0 %v5532_v2  ;;  %2385 = vmatpush1.bf16.msra.mxu1 %v5535_v3 }
  0xf4   :  { %2131 = vmatprep.subr.bf16.mxu0 %v5540_v4  ;;  %2386 = vmatprep.subr.bf16.mxu1 %v5543_v5 }
  0xf5   :  { %11 = vsyncpa [#allocation3], 0  ;;  %v5545_v10 = vld [vmem:[%s7205_s2 + $0x7c0] ss:$16 sps:$4 sm:$0xff]   ;;  %v5548_v11 = vld [vmem:[%s7205_s2 + $0x7c8] ss:$16 sps:$4 sm:$0xff]  }
  0xf6   :  { %v5554_v12 = vld [vmem:[%s7205_s2 + $0x7e4] ss:$16 sps:$4 sm:$0xff]   ;;  %v5557_v13 = vld [vmem:[%s7205_s2 + $0x7ec] ss:$16 sps:$4 sm:$0xff]   ;;  %v5552_v14 = vld [vmem:[%s7205_s2 + $0x7e0] ss:$16 sps:$4 sm:$0xff]  }
  0xf7   :  { %2132 = vmatpush1.bf16.msra.mxu0 %v5538_v6  ;;  %2387 = vmatpush1.bf16.msra.mxu1 %v5541_v7  ;;  %v5555_v15 = vld [vmem:[%s7205_s2 + $0x7e8] ss:$16 sps:$4 sm:$0xff]   ;;  %v5563_v16 = vld [vmem:[%s7205_s2 + $0x804] ss:$16 sps:$4 sm:$0xff]   ;;  %v5566_v17 = vld [vmem:[%s7205_s2 + $0x80c] ss:$16 sps:$4 sm:$0xff]  }
  0xf8   :  { %2133 = vmatprep.subr.bf16.mxu0 %v5547_v8  ;;  %2388 = vmatprep.subr.bf16.mxu1 %v5550_v9  ;;  %v5558_v18 = vld [vmem:[%s7203_s0 + $0x18] ss:$40 sps:$4 sm:$0xff]   ;;  %v38_v19 = vld [vmem:[%s7203_s0 + $0x68] sm:$0x11]  ;;  %v5569_v22 = vld [vmem:[%s7205_s2 + $0x824] ss:$16 sps:$4 sm:$0xff]  }
  0xf9   :  { %v5561_v20 = vld [vmem:[%s7205_s2 + $0x800] ss:$16 sps:$4 sm:$0xff]   ;;  %v5564_v21 = vld [vmem:[%s7205_s2 + $0x808] ss:$16 sps:$4 sm:$0xff]   ;;  %v5572_v23 = vld [vmem:[%s7205_s2 + $0x82c] ss:$16 sps:$4 sm:$0xff]   ;;  %v4160_v24 = vcombine.high %v38_v19, %v38_v19  ;;  %v4159_v29 = vcombine.low %v38_v19, %v38_v19 }
  0xfa   :  { %v5567_v25 = vld [vmem:[%s7205_s2 + $0x820] ss:$16 sps:$4 sm:$0xff]   ;;  %v5570_v26 = vld [vmem:[%s7205_s2 + $0x828] ss:$16 sps:$4 sm:$0xff]   ;;  %v5575_v27 = vld [vmem:[%s7205_s2 + $0x844] ss:$16 sps:$4 sm:$0xff]  }
  0xfb   :  { %2134 = vmatpush1.bf16.msra.mxu0 %v5545_v10  ;;  %2389 = vmatpush1.bf16.msra.mxu1 %v5548_v11  ;;  %v5578_v28 = vld [vmem:[%s7205_s2 + $0x84c] ss:$16 sps:$4 sm:$0xff]   ;;  %v5573_v30 = vld [vmem:[%s7205_s2 + $0x840] ss:$16 sps:$4 sm:$0xff]   ;;  %v5576_v31 = vld [vmem:[%s7205_s2 + $0x848] ss:$16 sps:$4 sm:$0xff]  }
  0xfc   :  { %2135 = vmatprep.subr.bf16.mxu0 %v5554_v12  ;;  %2390 = vmatprep.subr.bf16.mxu1 %v5557_v13  ;;  %v5581_v32 = vld [vmem:[%s7205_s2 + $0x864] ss:$16 sps:$4 sm:$0xff]   ;;  %v5584_v33 = vld [vmem:[%s7205_s2 + $0x86c] ss:$16 sps:$4 sm:$0xff]   ;;  %vm1945_vm0 = vcmask 392192   ;;  %vm2973_vm1 = vcmask 523264  }
  0xfd   :  { %v5631_v34 = vld [vmem:[%s7203_s0 + $0x24] ss:$40 sps:$4 sm:$0xff]   ;;  %v5579_v35 = vld [vmem:[%s7205_s2 + $0x860] ss:$16 sps:$4 sm:$0xff]   ;;  %v5582_v36 = vld [vmem:[%s7205_s2 + $0x868] ss:$16 sps:$4 sm:$0xff]  }
  0xfe   :  { %v5587_v37 = vld [vmem:[%s7205_s2 + $0x884] ss:$16 sps:$4 sm:$0xff]   ;;  %v5590_v38 = vld [vmem:[%s7205_s2 + $0x88c] ss:$16 sps:$4 sm:$0xff]   ;;  %v5585_v39 = vld [vmem:[%s7205_s2 + $0x880] ss:$16 sps:$4 sm:$0xff]  }
  0xff   :  { %2136 = vmatpush1.bf16.msra.mxu0 %v5552_v14  ;;  %2391 = vmatpush1.bf16.msra.mxu1 %v5555_v15  ;;  %v5588_v40 = vld [vmem:[%s7205_s2 + $0x888] ss:$16 sps:$4 sm:$0xff]   ;;  %v5593_v41 = vld [vmem:[%s7205_s2 + $0x8a4] ss:$16 sps:$4 sm:$0xff]   ;;  %v5596_v42 = vld [vmem:[%s7205_s2 + $0x8ac] ss:$16 sps:$4 sm:$0xff]  }
 0x100   :  { %2156 = vmatprep.subr.bf16.mxu0 %v5563_v16  ;;  %2411 = vmatprep.subr.bf16.mxu1 %v5566_v17  ;;  %v5591_v43 = vld [vmem:[%s7205_s2 + $0x8a0] ss:$16 sps:$4 sm:$0xff]   ;;  %v5594_v44 = vld [vmem:[%s7205_s2 + $0x8a8] ss:$16 sps:$4 sm:$0xff]   ;;  %v5599_v45 = vld [vmem:[%s7205_s2 + $0x8c4] ss:$16 sps:$4 sm:$0xff]  }
 0x101   :  { %v5602_v46 = vld [vmem:[%s7205_s2 + $0x8cc] ss:$16 sps:$4 sm:$0xff]   ;;  %v5597_v47 = vld [vmem:[%s7205_s2 + $0x8c0] ss:$16 sps:$4 sm:$0xff]   ;;  %v5600_v48 = vld [vmem:[%s7205_s2 + $0x8c8] ss:$16 sps:$4 sm:$0xff]  }
 0x102   :  { %2138 = vmatmul.mubr.bf16.vlgmr.msra.gmra.mrb[0].mxu0 %v5558_v18  ;;  %2393 = vmatmul.mubr.bf16.vlgmr.msra.gmra.mrb[0].mxu1 %v5558_v18  ;;  %v5605_v49 = vld [vmem:[%s7205_s2 + $0x8e4] ss:$16 sps:$4 sm:$0xff]   ;;  %v5608_v50 = vld [vmem:[%s7205_s2 + $0x8ec] ss:$16 sps:$4 sm:$0xff]   ;;  %v5603_v51 = vld [vmem:[%s7205_s2 + $0x8e0] ss:$16 sps:$4 sm:$0xff]  }
 0x103   :  { %2157 = vmatpush1.bf16.msra.mxu0 %v5561_v20  ;;  %2412 = vmatpush1.bf16.msra.mxu1 %v5564_v21  ;;  %v5606_v52 = vld [vmem:[%s7205_s2 + $0x8e8] ss:$16 sps:$4 sm:$0xff]   ;;  %v5611_v53 = vld [vmem:[%s7205_s2 + $0x904] ss:$16 sps:$4 sm:$0xff]   ;;  %v5614_v54 = vld [vmem:[%s7205_s2 + $0x90c] ss:$16 sps:$4 sm:$0xff]  }
 0x104   :  { %2158 = vmatprep.subr.bf16.mxu0 %v5569_v22  ;;  %2413 = vmatprep.subr.bf16.mxu1 %v5572_v23  ;;  %v5609_v55 = vld [vmem:[%s7205_s2 + $0x900] ss:$16 sps:$4 sm:$0xff]   ;;  %v5612_v56 = vld [vmem:[%s7205_s2 + $0x908] ss:$16 sps:$4 sm:$0xff]   ;;  %v5619_v57 = vld [vmem:[%s7205_s2 + $0x924] ss:$16 sps:$4 sm:$0xff]  }
 0x105   :  { %2147 = vmatprep.mubr.bf16.mxu0 %v4160_v24  ;;  %2402 = vmatprep.mubr.bf16.mxu1 %v4160_v24  ;;  %v5622_v58 = vld [vmem:[%s7205_s2 + $0x92c] ss:$16 sps:$4 sm:$0xff]   ;;  %v5617_v59 = vld [vmem:[%s7205_s2 + $0x920] ss:$16 sps:$4 sm:$0xff]   ;;  %v5620_v60 = vld [vmem:[%s7205_s2 + $0x928] ss:$16 sps:$4 sm:$0xff]  }
 0x106   :  { %v5625_v61 = vld [vmem:[%s7205_s2 + $0x944] ss:$16 sps:$4 sm:$0xff]   ;;  %v5628_v62 = vld [vmem:[%s7205_s2 + $0x94c] ss:$16 sps:$4 sm:$0xff]   ;;  %v5623_v63 = vld [vmem:[%s7205_s2 + $0x940] ss:$16 sps:$4 sm:$0xff]  }
 0x107   :  { %2159 = vmatpush1.bf16.msra.mxu0 %v5567_v25  ;;  %2414 = vmatpush1.bf16.msra.mxu1 %v5570_v26  ;;  %v5626_v0 = vld [vmem:[%s7205_s2 + $0x948] ss:$16 sps:$4 sm:$0xff]   ;;  %v39_v1 = vld [vmem:[%s7203_s0 + $0x70] sm:$0x11]  ;;  %v5634_v2 = vld [vmem:[%s7206_s3 + $0x40] sm:$0xff]   ;;  %vm5723_vm2 = vmmov 0  }
 0x108   :  { %2160 = vmatprep.subr.bf16.mxu0 %v5575_v27  ;;  %2415 = vmatprep.subr.bf16.mxu1 %v5578_v28  ;;  %v5635_v3 = vld [vmem:[%s7206_s3 + $0xc0] sm:$0xff]   ;;  %v4162_v5 = vcombine.high %v39_v1, %v39_v1  ;;  %v5638_v8 = vld [vmem:[%s7206_s3 + $0x48] sm:$0xff]   ;;  %v5642_v12 = vld [vmem:[%s7206_s3 + $0x50] sm:$0xff]   ;;  %v4161_v14 = vcombine.low %v39_v1, %v39_v1  ;;  %vm3175_vm3 = vcmask 1041408   ;;  %vm3171_vm4 = vcmask 146432   ;;  %s5724_s9 = smov [#allocation2]  }
 0x109   :  { %v5629_v4 = vld [vmem:[%s7203_s0 + $0x20] ss:$40 sps:$4 sm:$0xff]   ;;  %v5643_v13 = vld [vmem:[%s7206_s3 + $0xd0] sm:$0xff]   ;;  %v5646_v17 = vld [vmem:[%s7206_s3 + $0x58] sm:$0xff]   ;;  %vm3780_vm5 = vcmask 1043456   ;;  %vm3776_vm6 = vcmask 64512  }
 0x10a   :  { %2148 = vmatmul.mubr.bf16.gmra.mrb[4].mxu0 %v4159_v29  ;;  %2403 = vmatmul.mubr.bf16.gmra.mrb[4].mxu1 %v4159_v29  ;;  %v5636_v6 = vld [vmem:[%s7206_s3] sm:$0xff]   ;;  %v5639_v9 = vld [vmem:[%s7206_s3 + $0xc8] sm:$0xff]   ;;  %v5644_v15 = vld [vmem:[%s7206_s3 + $0x10] sm:$0xff]   ;;  %vm3845_vm7 = vcmask 162816   ;;  %vm3962_vm8 = vcmask 654336   ;;  %vm4021_vm9 = vcmask 326656  }
 0x10b   :  { %2161 = vmatpush1.bf16.msra.mxu0 %v5573_v30  ;;  %2416 = vmatpush1.bf16.msra.mxu1 %v5576_v31  ;;  %v5637_v7 = vld [vmem:[%s7206_s3 + $0x80] sm:$0xff]   ;;  %v5640_v10 = vld [vmem:[%s7206_s3 + $0x8] sm:$0xff]   ;;  %v5645_v16 = vld [vmem:[%s7206_s3 + $0x90] sm:$0xff]   ;;  %s4135_s10 = sshll.u32 %s5724_s9, 4  ;;  %vm4127_vm10 = vcmask 25600   ;;  %s4136_s10 = int_to_ptr.vmem [resolvable:$true] %s4135_s10 }
 0x10c   :  { %2162 = vmatprep.subr.bf16.mxu0 %v5581_v32  ;;  %2417 = vmatprep.subr.bf16.mxu1 %v5584_v33  ;;  %v5641_v11 = vld [vmem:[%s7206_s3 + $0x88] sm:$0xff]   ;;  %v5647_v18 = vld [vmem:[%s7206_s3 + $0xd8] sm:$0xff]   ;;  %v5650_v21 = vld [vmem:[%s7206_s3 + $0x60] sm:$0xff]   ;;  %p5701_p1 = scmp.lt.s32.totalorder %s4136_s10, %s4136_s10 }
 0x10d   :  { %4463 = vmatprep.mubr.msk.bf16.mxu0 %vm1945_vm0, %v5631_v34  ;;  %4465 = vmatprep.mubr.msk.bf16.mxu1 %vm1945_vm0, %v5631_v34  ;;  %v5648_v19 = vld [vmem:[%s7206_s3 + $0x18] sm:$0xff]   ;;  %v5651_v22 = vld [vmem:[%s7206_s3 + $0xe0] sm:$0xff]   ;;  %v5654_v25 = vld [vmem:[%s7206_s3 + $0x68] sm:$0xff]  }
 0x10e   :  { %v5649_v20 = vld [vmem:[%s7206_s3 + $0x98] sm:$0xff]   ;;  %v5652_v23 = vld [vmem:[%s7206_s3 + $0x20] sm:$0xff]   ;;  %v5655_v26 = vld [vmem:[%s7206_s3 + $0xe8] sm:$0xff]  }
 0x10f   :  { %2163 = vmatpush1.bf16.msra.mxu0 %v5579_v35  ;;  %2418 = vmatpush1.bf16.msra.mxu1 %v5582_v36  ;;  %v5653_v24 = vld [vmem:[%s7206_s3 + $0xa0] sm:$0xff]   ;;  %v5656_v27 = vld [vmem:[%s7206_s3 + $0x28] sm:$0xff]   ;;  %v5658_v29 = vld [vmem:[%s7206_s3 + $0x70] sm:$0xff]  }
 0x110   :  { %2164 = vmatprep.subr.bf16.mxu0 %v5587_v37  ;;  %2419 = vmatprep.subr.bf16.mxu1 %v5590_v38  ;;  %v5657_v28 = vld [vmem:[%s7206_s3 + $0xa8] sm:$0xff]   ;;  %v5659_v30 = vld [vmem:[%s7206_s3 + $0xf0] sm:$0xff]   ;;  %v5662_v33 = vld [vmem:[%s7206_s3 + $0x78] sm:$0xff]  }
 0x111   :  { %v5660_v31 = vld [vmem:[%s7206_s3 + $0x30] sm:$0xff]   ;;  %v5663_v34 = vld [vmem:[%s7206_s3 + $0xf8] sm:$0xff]   ;;  %v5671_v38 = vld [vmem:[%s7207_s4 + $0xc] ss:$20 sps:$4 sm:$0xff]  }
 0x112   :  { %v5661_v32 = vld [vmem:[%s7206_s3 + $0xb0] sm:$0xff]   ;;  %v5664_v35 = vld [vmem:[%s7206_s3 + $0x38] sm:$0xff]  }
 0x113   :  { %2165 = vmatpush1.bf16.msra.mxu0 %v5585_v39  ;;  %2420 = vmatpush1.bf16.msra.mxu1 %v5588_v40  ;;  %v5665_v36 = vld [vmem:[%s7206_s3 + $0xb8] sm:$0xff]   ;;  %v346_v39 = vlaneseq }
 0x114   :  { %2166 = vmatprep.subr.bf16.mxu0 %v5593_v41  ;;  %2421 = vmatprep.subr.bf16.mxu1 %v5596_v42  ;;  %v5668_v37 = vld [vmem:[%s7207_s4 + $0x4] ss:$20 sps:$4 sm:$0xff]   ;;  %v341_v42 = vld [vmem:[%s7205_s2 + $0x968] sm:$0x11] }
 0x115   :  { %v347_v40 = vshrl.u32 %v346_v39, 7  ;;  %v340_v41 = vld [vmem:[%s7205_s2 + $0x960] sm:$0x11]  ;;  %v5677_v39 = vld [vmem:[%s7207_s4 + $0x34] ss:$20 sps:$4 sm:$0xff]  }
 0x117   :  { %2167 = vmatpush1.bf16.msra.mxu0 %v5591_v43  ;;  %2422 = vmatpush1.bf16.msra.mxu1 %v5594_v44  ;;  %v342_v43 = vunpack.c.l.bf16 %v340_v41  ;;  %v6817_v44 = vsub.s32 0, %v347_v40  ;;  %v5672_v40 = vld [vmem:[%s7207_s4 + $0x28] ss:$20 sps:$4 sm:$0xff]  }
 0x118   :  { %2168 = vmatprep.subr.bf16.mxu0 %v5599_v45  ;;  %2423 = vmatprep.subr.bf16.mxu1 %v5602_v46  ;;  %v344_v45 = vunpack.c.l.bf16 %v341_v42  ;;  %v343_v46 = vunpack.c.h.bf16 %v340_v41  ;;  %v5675_v41 = vld [vmem:[%s7207_s4 + $0x30] ss:$20 sps:$4 sm:$0xff]  }
 0x11b   :  { %2169 = vmatpush1.bf16.msra.mxu0 %v5597_v47  ;;  %2424 = vmatpush1.bf16.msra.mxu1 %v5600_v48  ;;  %v345_v47 = vunpack.c.h.bf16 %v341_v42  ;;  %v349_v48 = vrot.slane %v342_v43, %v6817_v44  ;;  %v5680_v42 = vld [vmem:[%s7207_s4 + $0x54] ss:$20 sps:$4 sm:$0xff]   ;;  %v5683_v43 = vld [vmem:[%s7207_s4 + $0x5c] ss:$20 sps:$4 sm:$0xff]  }
 0x11c   :  { %2170 = vmatprep.subr.bf16.mxu0 %v5605_v49  ;;  %2425 = vmatprep.subr.bf16.mxu1 %v5608_v50  ;;  %v357_v49 = vrot.slane %v344_v45, %v6817_v44  ;;  %v353_v50 = vrot.slane %v343_v46, %v6817_v44  ;;  %v5678_v45 = vld [vmem:[%s7207_s4 + $0x50] ss:$20 sps:$4 sm:$0xff]   ;;  %v5681_v46 = vld [vmem:[%s7207_s4 + $0x58] ss:$20 sps:$4 sm:$0xff]  }
 0x11f   :  { %2171 = vmatpush1.bf16.msra.mxu0 %v5603_v51  ;;  %2426 = vmatpush1.bf16.msra.mxu1 %v5606_v52  ;;  %v361_v51 = vrot.slane %v345_v47, %v6817_v44  ;;  %v5686_v47 = vld [vmem:[%s7207_s4 + $0x7c] ss:$20 sps:$4 sm:$0xff]  }
 0x120   :  { %2172 = vmatprep.subr.bf16.mxu0 %v5611_v53  ;;  %2427 = vmatprep.subr.bf16.mxu1 %v5614_v54 }
 0x123   :  { %2173 = vmatpush1.bf16.msra.mxu0 %v5609_v55  ;;  %2428 = vmatpush1.bf16.msra.mxu1 %v5612_v56 }
 0x124   :  { %2174 = vmatprep.subr.bf16.mxu0 %v5619_v57  ;;  %2429 = vmatprep.subr.bf16.mxu1 %v5622_v58 }
 0x127   :  { %2175 = vmatpush1.bf16.msra.mxu0 %v5617_v59  ;;  %2430 = vmatpush1.bf16.msra.mxu1 %v5620_v60 }
 0x128   :  { %2176 = vmatprep.subr.bf16.mxu0 %v5625_v61  ;;  %2431 = vmatprep.subr.bf16.mxu1 %v5628_v62 }
 0x12b   :  { %2177 = vmatpush1.bf16.msra.mxu0 %v5623_v63  ;;  %2432 = vmatpush1.bf16.msra.mxu1 %v5626_v0 }
 0x12c   :  { %4725 = vmatprep.subr.bf16.mxu0 %v5634_v2  ;;  %4753 = vmatprep.subr.bf16.mxu1 %v5635_v3 }
 0x12e   :  { %2189 = vmatmul.mubr.bf16.vlgmr.msra.gmra.mrb[0].mxu0 %v5629_v4  ;;  %2444 = vmatmul.mubr.bf16.vlgmr.msra.gmra.mrb[0].mxu1 %v5629_v4 }
 0x12f   :  { %4464 = vmatprep.mubr.msk.bf16.mxu0 %vm1945_vm0, %v4162_v5  ;;  %4466 = vmatprep.mubr.msk.bf16.mxu1 %vm1945_vm0, %v4162_v5 }
 0x130   :  { %4726 = vmatpush3.bf16.msra.mxu0 %v5636_v6  ;;  %4754 = vmatpush3.bf16.msra.mxu1 %v5637_v7 }
 0x131   :  { %4727 = vmatprep.subr.bf16.mxu0 %v5638_v8  ;;  %4755 = vmatprep.subr.bf16.mxu1 %v5639_v9 }
 0x134   :  { %4728 = vmatpush3.bf16.msra.mxu0 %v5640_v10  ;;  %4756 = vmatpush3.bf16.msra.mxu1 %v5641_v11 }
 0x135   :  { %4729 = vmatprep.subr.bf16.mxu0 %v5642_v12  ;;  %4757 = vmatprep.subr.bf16.mxu1 %v5643_v13 }
 0x136   :  { %2199 = vmatmul.mubr.bf16.gmra.mrb[4].mxu0 %v4161_v14  ;;  %2454 = vmatmul.mubr.bf16.gmra.mrb[4].mxu1 %v4161_v14 }
 0x138   :  { %4730 = vmatpush3.bf16.msra.mxu0 %v5644_v15  ;;  %4758 = vmatpush3.bf16.msra.mxu1 %v5645_v16 }
 0x139   :  { %4731 = vmatprep.subr.bf16.mxu0 %v5646_v17  ;;  %4759 = vmatprep.subr.bf16.mxu1 %v5647_v18  ;;  %v5666_v18 = vld [vmem:[%s7207_s4] ss:$20 sps:$4 sm:$0xff]  }
 0x13c   :  { %4732 = vmatpush3.bf16.msra.mxu0 %v5648_v19  ;;  %4760 = vmatpush3.bf16.msra.mxu1 %v5649_v20  ;;  %v5669_v19 = vld [vmem:[%s7207_s4 + $0x8] ss:$20 sps:$4 sm:$0xff]  }
 0x13d   :  { %4733 = vmatprep.subr.bf16.mxu0 %v5650_v21  ;;  %4761 = vmatprep.subr.bf16.mxu1 %v5651_v22 }
 0x140   :  { %4734 = vmatpush3.bf16.msra.mxu0 %v5652_v23  ;;  %4762 = vmatpush3.bf16.msra.mxu1 %v5653_v24 }
 0x141   :  { %4735 = vmatprep.subr.bf16.mxu0 %v5654_v25  ;;  %4763 = vmatprep.subr.bf16.mxu1 %v5655_v26 }
 0x144   :  { %4736 = vmatpush3.bf16.msra.mxu0 %v5656_v27  ;;  %4764 = vmatpush3.bf16.msra.mxu1 %v5657_v28 }
 0x145   :  { %4737 = vmatprep.subr.bf16.mxu0 %v5658_v29  ;;  %4765 = vmatprep.subr.bf16.mxu1 %v5659_v30 }
 0x148   :  { %4738 = vmatpush3.bf16.msra.mxu0 %v5660_v31  ;;  %4766 = vmatpush3.bf16.msra.mxu1 %v5661_v32 }
 0x149   :  { %4739 = vmatprep.subr.bf16.mxu0 %v5662_v33  ;;  %4767 = vmatprep.subr.bf16.mxu1 %v5663_v34 }
 0x14c   :  { %4740 = vmatpush3.bf16.msra.mxu0 %v5664_v35  ;;  %4768 = vmatpush3.bf16.msra.mxu1 %v5665_v36 }
 0x14d   :  { %2980 = vmatprep.subr.bf16.mxu0 %v5668_v37  ;;  %3031 = vmatprep.subr.bf16.mxu1 %v5671_v38  ;;  %v5674_v38 = vld [vmem:[%s7207_s4 + $0x2c] ss:$20 sps:$4 sm:$0xff]  }
 0x201   :  { %v2190_v52 = vpop.f32.mrb[0].mxu0  ;;  %v2445_v53 = vpop.f32.mrb[0].mxu1 }
 0x202   :  { %v5078_v54 = vadd.f32 %v2190_v52, %v349_v48  ;;  %v5084_v55 = vadd.f32 %v2445_v53, %v357_v49  ;;  %v2192_v56 = vpop.f32.mrb[1].mxu0  ;;  %v2447_v57 = vpop.f32.mrb[1].mxu1  ;;  %v5720_v52 = vmov 0   ;;  %v2546_v53 = vld [vmem:[%s7206_s3 + $0x220] sm:$0x1] }
 0x203   :  { %v5079_v58 = vadd.f32 %v2192_v56, %v353_v50  ;;  %v5085_v59 = vadd.f32 %v2447_v57, %v361_v51  ;;  %v2194_v60 = vpop.f32.mrb[2].mxu0  ;;  %v2449_v61 = vpop.f32.mrb[2].mxu1 }
 0x204   :  { %v5080_v62 = vadd.f32 %v2194_v60, %v349_v48  ;;  %v5086_v63 = vadd.f32 %v2449_v61, %v357_v49  ;;  %v2196_v0 = vpop.f32.mrb[3].mxu0  ;;  %v2451_v1 = vpop.f32.mrb[3].mxu1  ;;  %v2462_v4 = vmax.f32 %v5078_v54, 0.0  ;;  %v2464_v5 = vmax.f32 %v5084_v55, 0.0 }
 0x205   :  { %v5081_v2 = vadd.f32 %v2196_v0, %v353_v50  ;;  %v5087_v3 = vadd.f32 %v2451_v1, %v361_v51  ;;  %v2463_v8 = vmax.f32 %v5079_v58, 0.0  ;;  %v2465_v9 = vmax.f32 %v5085_v59, 0.0 }
 0x206   :  { %v2466_v6 = vmax.f32 %v5080_v62, 0.0  ;;  %v2468_v7 = vmax.f32 %v5086_v63, 0.0  ;;  %v2547_v54 = vunpack.c.l.bf16 %v2546_v53 }
 0x207   :  { %v2467_v10 = vmax.f32 %v5081_v2, 0.0  ;;  %v2469_v11 = vmax.f32 %v5087_v3, 0.0 }
 0x208   :  { %v2474_v12 = vpack.c.bf16 %v2466_v6, %v2462_v4  ;;  %v2476_v13 = vpack.c.bf16 %v2468_v7, %v2464_v5  ;;  %v2551_v57 = vrot.slane %v2547_v54, %v6817_v44 }
 0x209   :  { %v2475_v14 = vpack.c.bf16 %v2467_v10, %v2463_v8  ;;  %v2477_v15 = vpack.c.bf16 %v2469_v11, %v2465_v9  ;;  %v2200_v16 = vpop.f32.mrb[4].mxu0  ;;  %v2455_v17 = vpop.f32.mrb[4].mxu1 }
 0x20a   :  { %v5082_v20 = vadd.f32 %v2200_v16, %v349_v48  ;;  %v5088_v21 = vadd.f32 %v2455_v17, %v357_v49  ;;  %v2202_v22 = vpop.f32.mrb[5].mxu0  ;;  %v2457_v23 = vpop.f32.mrb[5].mxu1  ;;  %v5689_v48 = vld [vmem:[%s7207_s4 + $0x84] ss:$20 sps:$4 sm:$0xff]  }
 0x20b   :  { %v5083_v24 = vadd.f32 %v2202_v22, %v353_v50  ;;  %v5089_v25 = vadd.f32 %v2457_v23, %v361_v51  ;;  %v2204_v26 = vpop.f32.mrb[6].mxu0  ;;  %v2459_v27 = vpop.f32.mrb[6].mxu1  ;;  %2776 = vmatprep.mubr.bf16.mxu0 %v2475_v14  ;;  %2824 = vmatprep.mubr.bf16.mxu1 %v2477_v15  ;;  %v5684_v49 = vld [vmem:[%s7207_s4 + $0x78] ss:$20 sps:$4 sm:$0xff]   ;;  %v5687_v50 = vld [vmem:[%s7207_s4 + $0x80] ss:$20 sps:$4 sm:$0xff]  }
 0x20c   :  { %v2205_v28 = vpop.f32.mrb[7].mxu0  ;;  %v2460_v29 = vpop.f32.mrb[7].mxu1  ;;  %2777 = vmatmul.mubr.bf16.vlgmr.msra.gmra.mrb[8].mxu0 %v2474_v12  ;;  %2825 = vmatmul.mubr.bf16.vlgmr.msra.gmra.mrb[8].mxu1 %v2476_v13  ;;  %v2470_v32 = vmax.f32 %v5082_v20, 0.0  ;;  %v2472_v33 = vmax.f32 %v5088_v21, 0.0  ;;  %v5690_v51 = vld [vmem:[%s7207_s4 + $0x10] ss:$20 sps:$4 sm:$0xff]  }
 0x20d   :  { %v2471_v30 = vmax.f32 %v5083_v24, 0.0  ;;  %v2473_v31 = vmax.f32 %v5089_v25, 0.0  ;;  %2981 = vmatpush1.bf16.msra.mxu0 %v5666_v18  ;;  %3032 = vmatpush1.bf16.msra.mxu1 %v5669_v19  ;;  %v5691_v22 = vld [vmem:[%s7207_s4 + $0x38] ss:$20 sps:$4 sm:$0xff]   ;;  %v5692_v25 = vld [vmem:[%s7207_s4 + $0x60] ss:$20 sps:$4 sm:$0xff]  }
 0x20e   :  { %v2478_v36 = vpack.c.bf16 %v2470_v32, %v2470_v32  ;;  %v2480_v37 = vpack.c.bf16 %v2472_v33, %v2472_v33  ;;  %2982 = vmatprep.subr.bf16.mxu0 %v5674_v38  ;;  %3033 = vmatprep.subr.bf16.mxu1 %v5677_v39  ;;  %v5693_v27 = vld [vmem:[%s7207_s4 + $0x88] ss:$20 sps:$4 sm:$0xff]   ;;  %v5721_v28 = vmov 0.0   ;;  %v5722_v29 = vmov 0.0|0.0   ;;  %v3133_v32 = vld [vmem:[%s7207_s4 + $0xb4] sm:$0xff] }
 0x20f   :  { %v2479_v34 = vpack.c.bf16 %v2471_v30, %v2471_v30  ;;  %v2481_v35 = vpack.c.bf16 %v2473_v31, %v2473_v31  ;;  %v3130_v30 = vld [vmem:[%s7207_s4 + $0xa0] sm:$0xff]  ;;  %v3131_v31 = vld [vmem:[%s7207_s4 + $0xa8] sm:$0xff] }
 0x210   :  { %v3134_v33 = vld [vmem:[%s7207_s4 + $0xbc] sm:$0xff] }
 0x211   :  { %2784 = vmatprep.mubr.bf16.mxu0 %v2479_v34  ;;  %2832 = vmatprep.mubr.bf16.mxu1 %v2481_v35  ;;  %v3139_v34 = vunpack.c.l.bf16 %v3130_v30  ;;  %v3141_v35 = vunpack.c.l.bf16 %v3131_v31 }
 0x212   :  { %2983 = vmatpush1.bf16.msra.mxu0 %v5672_v40  ;;  %3034 = vmatpush1.bf16.msra.mxu1 %v5675_v41  ;;  %v3140_v40 = vunpack.c.h.bf16 %v3130_v30  ;;  %v3142_v41 = vunpack.c.h.bf16 %v3131_v31  ;;  %v4698_v31 = vld [vmem:[%s7206_s3 + $0x148] sm:$0xff]  }
 0x213   :  { %2984 = vmatprep.subr.bf16.mxu0 %v5680_v42  ;;  %3035 = vmatprep.subr.bf16.mxu1 %v5683_v43  ;;  %v3145_v42 = vunpack.c.h.bf16 %v3133_v32  ;;  %v3147_v43 = vunpack.c.h.bf16 %v3134_v33 }
 0x214   :  { %2785 = vmatmul.mubr.bf16.gmra.mrb[12].mxu0 %v2478_v36  ;;  %2833 = vmatmul.mubr.bf16.gmra.mrb[12].mxu1 %v2480_v37  ;;  %v3144_v36 = vunpack.c.l.bf16 %v3133_v32  ;;  %v3146_v37 = vunpack.c.l.bf16 %v3134_v33 }
 0x215   :  { %3012 = vmatprep.mubr.bf16.mxu0 %v5720_v52  ;;  %3063 = vmatprep.mubr.bf16.mxu1 %v5720_v52 }
 0x216   :  { %2985 = vmatpush1.bf16.msra.mxu0 %v5678_v45  ;;  %3036 = vmatpush1.bf16.msra.mxu1 %v5681_v46 }
 0x217   :  { %2986 = vmatprep.subr.bf16.mxu0 %v5686_v47  ;;  %3037 = vmatprep.subr.bf16.mxu1 %v5689_v48 }
 0x21a   :  { %2987 = vmatpush1.bf16.msra.mxu0 %v5684_v49  ;;  %3038 = vmatpush1.bf16.msra.mxu1 %v5687_v50 }
 0x21b   :  { %4893 = vmatprep.subr.bf16.mxu0 %v5690_v51 }
 0x2df   :  { %v4741_v55 = vpop.f32.mrb[8].mxu0  ;;  %v4769_v56 = vpop.f32.mrb[8].mxu1 }
 0x2e0   :  { %v4742_v58 = vpop.f32.mrb[9].mxu0  ;;  %v4770_v59 = vpop.f32.mrb[9].mxu1 }
 0x2e1   :  { %v4743_v60 = vadd.f32 %v4742_v58, %v4741_v55  ;;  %v4771_v61 = vadd.f32 %v4770_v59, %v4769_v56  ;;  %v4744_v62 = vpop.f32.mrb[10].mxu0  ;;  %v4772_v63 = vpop.f32.mrb[10].mxu1  ;;  %v3136_v55 = vld [vmem:[%s7207_s4 + $0xc8] sm:$0x11] }
 0x2e2   :  { %v4745_v0 = vpop.f32.mrb[11].mxu0  ;;  %v4773_v1 = vpop.f32.mrb[11].mxu1 }
 0x2e3   :  { %v2779_v2 = vadd.f32 %v4743_v60, %v2551_v57  ;;  %v4746_v3 = vadd.f32 %v4745_v0, %v4744_v62  ;;  %v4774_v4 = vadd.f32 %v4773_v1, %v4772_v63  ;;  %v3150_v0 = vunpack.c.h.bf16 %v3136_v55 }
 0x2e4   :  { %v3149_v1 = vunpack.c.l.bf16 %v3136_v55  ;;  %v4717_v55 = vld [vmem:[%s7206_s3 + $0x1e0] sm:$0xff]  }
 0x2e5   :  { %v2827_v5 = vadd.f32 %v4771_v61, %v2779_v2  ;;  %v2782_v6 = vadd.f32 %v4746_v3, %v2551_v57  ;;  %v3137_v2 = vld [vmem:[%s7207_s4 + $0xd0] sm:$0x11]  ;;  %v3169_v3 = vld [vmem:[%s7206_s3 + $0x228] sm:$0x1] }
 0x2e7   :  { %v2830_v7 = vadd.f32 %v4774_v4, %v2782_v6  ;;  %v4747_v8 = vpop.f32.mrb[12].mxu0  ;;  %v4775_v9 = vpop.f32.mrb[12].mxu1  ;;  %v2840_v12 = vmax.f32 %v2827_v5, 0.0 }
 0x2e8   :  { %v4748_v10 = vpop.f32.mrb[13].mxu0  ;;  %v4776_v11 = vpop.f32.mrb[13].mxu1 }
 0x2e9   :  { %v2841_v13 = vmax.f32 %v2830_v7, 0.0  ;;  %v4749_v14 = vadd.f32 %v4748_v10, %v4747_v8  ;;  %v4777_v15 = vadd.f32 %v4776_v11, %v4775_v9  ;;  %v4750_v16 = vpop.f32.mrb[14].mxu0  ;;  %v4778_v17 = vpop.f32.mrb[14].mxu1  ;;  %v3152_v9 = vunpack.c.h.bf16 %v3137_v2 }
 0x2ea   :  { %v4751_v18 = vpop.f32.mrb[15].mxu0  ;;  %v4779_v19 = vpop.f32.mrb[15].mxu1  ;;  %v3151_v16 = vunpack.c.l.bf16 %v3137_v2  ;;  %v3132_v17 = vld [vmem:[%s7207_s4 + $0xb0] ss:$20 sps:$4 sm:$0xff]   ;;  %v4712_v2 = vld [vmem:[%s7206_s3 + $0x1b8] sm:$0xff]  }
 0x2eb   :  { %v2843_v20 = vpack.c.bf16 %v2841_v13, %v2840_v12  ;;  %v2787_v21 = vadd.f32 %v4749_v14, %v2551_v57  ;;  %v3170_v12 = vunpack.c.l.bf16 %v3169_v3 }
 0x2ed   :  { %v2835_v23 = vadd.f32 %v4777_v15, %v2787_v21  ;;  %4519 = vmatmul.mubr.msk.bf16.vlgmr.msra.gmra.mrb[16].mxu0 %vm2973_vm1, %v2843_v20  ;;  %4521 = vmatmul.mubr.msk.bf16.vlgmr.msra.gmra.mrb[16].mxu1 %vm2973_vm1, %v2843_v20  ;;  %v3148_v21 = vunpack.c.h.bf16 %v3132_v17 }
 0x2ee   :  { %4894 = vmatpush3.bf16.msra.mxu0 %v5690_v51  ;;  %3022 = vmatprep.mubr.bf16.mxu0 %v5720_v52 }
 0x2ef   :  { %v2842_v24 = vmax.f32 %v2835_v23, 0.0  ;;  %4895 = vmatprep.subr.bf16.mxu0 %v5691_v22  ;;  %3073 = vmatprep.mubr.bf16.mxu1 %v5720_v52 }
 0x2f1   :  { %v2844_v26 = vpack.c.bf16 %v2842_v24, %v2842_v24  ;;  %v4697_v24 = vld [vmem:[%s7206_s3 + $0x140] sm:$0xff]  }
 0x2f2   :  { %4896 = vmatpush3.bf16.msra.mxu0 %v5691_v22 }
 0x2f3   :  { %4897 = vmatprep.subr.bf16.mxu0 %v5692_v25 }
 0x2f5   :  { %4520 = vmatmul.mubr.msk.bf16.gmra.mrb[20].mxu0 %vm2973_vm1, %v2844_v26  ;;  %4522 = vmatmul.mubr.msk.bf16.gmra.mrb[20].mxu1 %vm2973_vm1, %v2844_v26 }
 0x2f6   :  { %4898 = vmatpush3.bf16.msra.mxu0 %v5692_v25  ;;  %4901 = vmatprep.mubr.msk.bf16.mxu0 %vm2973_vm1, %v2843_v20  ;;  %v3143_v20 = vunpack.c.l.bf16 %v3132_v17 }
 0x2f7   :  { %4899 = vmatprep.subr.bf16.mxu0 %v5693_v27  ;;  %3255 = vmatprep.mubr.f32.mxu1 %v5721_v28 }
 0x2fa   :  { %4900 = vmatpush3.bf16.msra.mxu0 %v5693_v27  ;;  %v3138_v27 = vld [vmem:[%s7207_s4 + $0xd8] sm:$0x1]  ;;  %s5696_s4 = scalar_lea.vmem %s4136_s10, 32 }
 0x2fb   :  { %4999 = vmatprep.subr.bf16.mxu0 %v5722_v29  ;;  %p5697_p0 = scmp.ne.s32.totalorder %s4136_s10, %s5696_s4  ;;  %p5702_p2 = scmp.lt.s32.totalorder %s5696_s4, %s5696_s4 }
 0x2fd   :  { %4902 = vmatmul.mubr.msk.bf16.vlgmr.msra.gmra.mrb[24].mxu0 %vm2973_vm1, %v2844_v26  ;;  %v4689_v26 = vld [vmem:[%s7206_s3 + $0x100] sm:$0xff]   ;;  %p5703_p3 = por %p5702_p2, %p5701_p1 }
 0x2fe   :  { %4911 = vmatprep.mubr.msk.f32.mxu0 %vm5723_vm2, %v5721_v28 }
 0x2ff   :  { %p5704_p4 = pnand %p5703_p3, %p5697_p0 }
 0x3c0   :  { %v3014_v38 = vpop.f32.mrb[16].mxu0  ;;  %v3065_v39 = vpop.f32.mrb[16].mxu1 }
 0x3c1   :  { %v3016_v45 = vpop.f32.mrb[17].mxu0  ;;  %v3067_v46 = vpop.f32.mrb[17].mxu1  ;;  %v3154_v49 = vmul.f32 %v3139_v34, %v3014_v38  ;;  %v3156_v50 = vmul.f32 %v3141_v35, %v3065_v39  ;;  %v3153_v34 = vunpack.c.l.bf16 %v3138_v27  ;;  %v4713_v39 = vld [vmem:[%s7206_s3 + $0x1c0] sm:$0xff]  }
 0x3c2   :  { %v3018_v47 = vpop.f32.mrb[18].mxu0  ;;  %v3069_v48 = vpop.f32.mrb[18].mxu1  ;;  %v3155_v56 = vmul.f32 %v3140_v40, %v3016_v45  ;;  %v3157_v57 = vmul.f32 %v3142_v41, %v3067_v46  ;;  %v4705_v40 = vld [vmem:[%s7206_s3 + $0x180] sm:$0xff]   ;;  %v4691_v41 = vld [vmem:[%s7206_s3 + $0x110] sm:$0xff]   ;;  %v4706_v45 = vld [vmem:[%s7206_s3 + $0x188] sm:$0xff]  }
 0x3c3   :  { %v3159_v51 = vmul.f32 %v3144_v36, %v3018_v47  ;;  %v3161_v52 = vmul.f32 %v3146_v37, %v3069_v48  ;;  %v3020_v53 = vpop.f32.mrb[19].mxu0  ;;  %v3071_v54 = vpop.f32.mrb[19].mxu1  ;;  %v4690_v36 = vld [vmem:[%s7206_s3 + $0x108] sm:$0xff]   ;;  %v4699_v37 = vld [vmem:[%s7206_s3 + $0x150] sm:$0xff]   ;;  %v4692_v46 = vld [vmem:[%s7206_s3 + $0x118] sm:$0xff]  }
 0x3c4   :  { %v3160_v58 = vmul.f32 %v3145_v42, %v3020_v53  ;;  %v3162_v59 = vmul.f32 %v3147_v43, %v3071_v54  ;;  %v4714_v42 = vld [vmem:[%s7206_s3 + $0x1c8] sm:$0xff]   ;;  %v4700_v43 = vld [vmem:[%s7206_s3 + $0x158] sm:$0xff]   ;;  %v4715_v47 = vld [vmem:[%s7206_s3 + $0x1d0] sm:$0xff]  }
 0x3c5   :  { %v4993_v60 = vpack.c.bf16 %v3159_v51, %v3154_v49  ;;  %v4997_v61 = vpack.c.bf16 %v3161_v52, %v3156_v50  ;;  %v4701_v48 = vld [vmem:[%s7206_s3 + $0x160] sm:$0xff]   ;;  %v4707_v49 = vld [vmem:[%s7206_s3 + $0x190] sm:$0xff]   ;;  %v4716_v51 = vld [vmem:[%s7206_s3 + $0x1d8] sm:$0xff]  }
 0x3c6   :  { %v4991_v62 = vpack.c.bf16 %v3160_v58, %v3155_v56  ;;  %v4995_v63 = vpack.c.bf16 %v3162_v59, %v3157_v57  ;;  %v4693_v50 = vld [vmem:[%s7206_s3 + $0x120] sm:$0xff]   ;;  %v4702_v52 = vld [vmem:[%s7206_s3 + $0x168] sm:$0xff]   ;;  %v4708_v53 = vld [vmem:[%s7206_s3 + $0x198] sm:$0xff]  }
 0x3c7   :  { %v4694_v54 = vld [vmem:[%s7206_s3 + $0x128] sm:$0xff]   ;;  %v4703_v56 = vld [vmem:[%s7206_s3 + $0x170] sm:$0xff]   ;;  %v4709_v57 = vld [vmem:[%s7206_s3 + $0x1a0] sm:$0xff]  }
 0x3c8   :  { %v3024_v4 = vpop.f32.mrb[20].mxu0  ;;  %v3075_v5 = vpop.f32.mrb[20].mxu1  ;;  %4992 = vmatprep.subr.bf16.mxu1 %v4991_v62  ;;  %v4695_v58 = vld [vmem:[%s7206_s3 + $0x130] sm:$0xff]   ;;  %v4718_v59 = vld [vmem:[%s7206_s3 + $0x1e8] sm:$0xff]   ;;  %v4696_v62 = vld [vmem:[%s7206_s3 + $0x138] sm:$0xff]  }
 0x3c9   :  { %v3026_v6 = vpop.f32.mrb[21].mxu0  ;;  %v3077_v7 = vpop.f32.mrb[21].mxu1  ;;  %4994 = vmatpush1.bf16.msra.mxu1 %v4993_v60  ;;  %v3164_v13 = vmul.f32 %v3149_v1, %v3024_v4  ;;  %v3166_v22 = vmul.f32 %v3151_v16, %v3075_v5  ;;  %v4704_v60 = vld [vmem:[%s7206_s3 + $0x178] sm:$0xff]   ;;  %v3769_v4 = vld [vmem:[%s7208_s5 + $0xe8] sm:$0xff] }
 0x3ca   :  { %v3165_v8 = vmul.f32 %v3150_v0, %v3026_v6  ;;  %v3028_v10 = vpop.f32.mrb[22].mxu0  ;;  %v3079_v11 = vpop.f32.mrb[22].mxu1  ;;  %v3167_v18 = vmul.f32 %v3152_v9, %v3077_v7  ;;  %v4711_v0 = vld [vmem:[%s7206_s3 + $0x1b0] sm:$0xff]   ;;  %v4720_v1 = vld [vmem:[%s7206_s3 + $0x1f8] sm:$0xff]   ;;  %v4721_v6 = vld [vmem:[%s7206_s3 + $0x200] sm:$0xff]   ;;  %v3770_v7 = vpack.c.bf16 %v3769_v4, %v3769_v4 }
 0x3cb   :  { %v3029_v14 = vpop.f32.mrb[23].mxu0  ;;  %v3080_v15 = vpop.f32.mrb[23].mxu1  ;;  %v3767_v10 = vld [vmem:[%s7204_s1] sm:$0x3] }
 0x3cc   :  { %4525 = vmatprep.subr.msk.mxu1 %vm3175_vm3, %v3165_v8  ;;  %v4722_v8 = vld [vmem:[%s7206_s3 + $0x208] sm:$0xff]   ;;  %v3768_v14 = vpack.c.bf16 %v3767_v10, %v3767_v10  ;;  %v4724_v15 = vld [vmem:[%s7206_s3 + $0x218] sm:$0xff]   ;;  %v3946_v4 = vld [vmem:[%s7208_s5 + $0x80] sm:$0xff] }
 0x3cd   :  { %4526 = vmatpush1.msk.msra.mxu1 %vm3175_vm3, %v3164_v13  ;;  %v4723_v13 = vld [vmem:[%s7206_s3 + $0x210] sm:$0xff]   ;;  %v3950_v10 = vld [vmem:[%s7208_s5 + $0xa0] sm:$0xff] }
 0x3ce   :  { %4527 = vmatmul.mubr.msk.f32.vlgmr.msra.gmra.mrb[24].mxu1 %vm3171_vm4, %v3170_v12  ;;  %4996 = vmatprep.subr.bf16.mxu1 %v4995_v63  ;;  %v4719_v63 = vld [vmem:[%s7206_s3 + $0x1f0] sm:$0xff]  }
 0x3cf   :  { %4998 = vmatpush1.bf16.msra.mxu1 %v4997_v61  ;;  %3326 = vmatprep.mubr.f32.mxu1 %v5721_v28  ;;  %v4710_v61 = vld [vmem:[%s7206_s3 + $0x1a8] sm:$0xff]  }
 0x3d0   :  { %v4903_v19 = vpop.f32.mrb[24].mxu0  ;;  %4528 = vmatprep.subr.msk.mxu1 %vm3175_vm3, %v3167_v18  ;;  %v3838_v18 = vld [vmem:[%s7208_s5 + $0x48] sm:$0xff] }
 0x3d1   :  { %v3116_v23 = vpop.f32.mrb[25].mxu0  ;;  %v3168_v38 = vmul.f32 %v4903_v19, %v3153_v34 }
 0x3d2   :  { %v4904_v25 = vpop.f32.mrb[26].mxu0  ;;  %v3158_v32 = vmul.f32 %v3143_v20, %v3116_v23  ;;  %v3839_v20 = vld [vmem:[%s7208_s5 + $0x50] sm:$0xf]  ;;  %v3941_v23 = vld [vmem:[%s7208_s5 + $0x58] sm:$0xff] }
 0x3d3   :  { %v3119_v30 = vpop.f32.mrb[27].mxu0  ;;  %4529 = vmatpush1.msk.msra.mxu1 %vm3175_vm3, %v3166_v22 }
 0x3d4   :  { %v3163_v33 = vmul.f32 %v3148_v21, %v3119_v30  ;;  %4530 = vmatmul.mubr.msk.f32.vlgmr.msra.gmra.mrb[26].mxu1 %vm3171_vm4, %v3170_v12  ;;  %5003 = vmatprep.subr.bf16.mxu1 %v4697_v24  ;;  %v3841_v21 = vpack.c.bf16 %v3839_v20, %v3839_v20  ;;  %v3942_v24 = vld [vmem:[%s7208_s5 + $0x60] sm:$0xff] }
 0x3d5   :  { %5005 = vmatpush3.bf16.msra.mxu1 %v4689_v26  ;;  %v3951_v25 = vpack.c.bf16 %v3942_v24, %v3941_v23  ;;  %v3547_v26 = vld [vmem:[%s7206_s3 + $0x224] sm:$0x1] }
 0x3d6   :  { %v5000_v35 = vpack.c.bf16 %v3163_v33, %v3158_v32  ;;  %5007 = vmatprep.subr.bf16.mxu1 %v4698_v31  ;;  %v3850_v22 = vsel %vm3175_vm3, %v3841_v21, 0  ;;  %v3548_v30 = vunpack.c.l.bf16 %v3547_v26 }
 0x3d8   :  { %5001 = vmatpush3.bf16.msra.mxu0 %v5000_v35  ;;  %v3552_v33 = vrot.slane %v3548_v30, %v6817_v44  ;;  %v4010_v30 = vld [vmem:[%s7208_s5 + $0xc0] sm:$0xff] }
 0x3d9   :  { %4909 = vmatprep.subr.mxu0 %v5721_v28  ;;  %5009 = vmatpush3.bf16.msra.mxu1 %v4690_v36 }
 0x3da   :  { %5011 = vmatprep.subr.bf16.mxu1 %v4699_v37 }
 0x3dc   :  { %4910 = vmatpush3.msk.msra.mxu0 %vm3175_vm3, %v3168_v38  ;;  %v4534_v38 = vld [vmem:[%s7208_s5 + $0x110] ss:$0 sm:$0xff] }
 0x3dd   :  { %4912 = vmatmul.mubr.msk.f32.vlgmr.msra.gmra.mrb[28].mxu0 %vm3171_vm4, %v3170_v12  ;;  %5035 = vmatprep.subr.bf16.mxu0 %v4713_v39  ;;  %v3782_v12 = vsel %vm3780_vm5, %v3770_v7, 0  ;;  %v3948_v7 = vld [vmem:[%s7208_s5 + $0x90] sm:$0xff] }
 0x3de   :  { %5037 = vmatpush3.bf16.msra.mxu0 %v4705_v40  ;;  %5013 = vmatpush3.bf16.msra.mxu1 %v4691_v41 }
 0x3df   :  { %5039 = vmatprep.subr.bf16.mxu0 %v4714_v42  ;;  %5015 = vmatprep.subr.bf16.mxu1 %v4700_v43  ;;  %v3825_v42 = vld [vmem:[%s7208_s5] sm:$0xff]  ;;  %v3826_v43 = vld [vmem:[%s7208_s5 + $0x8] sm:$0xff] }
 0x3e2   :  { %5041 = vmatpush3.bf16.msra.mxu0 %v4706_v45  ;;  %5017 = vmatpush3.bf16.msra.mxu1 %v4692_v46 }
 0x3e3   :  { %5043 = vmatprep.subr.bf16.mxu0 %v4715_v47  ;;  %5019 = vmatprep.subr.bf16.mxu1 %v4701_v48  ;;  %v3833_v48 = vpack.c.bf16 %v3826_v43, %v3825_v42  ;;  %v4069_v43 = vld [vmem:[%s7208_s5 + $0xd0] sm:$0xff] }
 0x3e6   :  { %5045 = vmatpush3.bf16.msra.mxu0 %v4707_v49  ;;  %5021 = vmatpush3.bf16.msra.mxu1 %v4693_v50  ;;  %v3827_v50 = vld [vmem:[%s7208_s5 + $0x10] sm:$0xff] }
 0x3e7   :  { %5047 = vmatprep.subr.bf16.mxu0 %v4716_v51  ;;  %5023 = vmatprep.subr.bf16.mxu1 %v4702_v52  ;;  %v3828_v51 = vld [vmem:[%s7208_s5 + $0x18] sm:$0xff] }
 0x3ea   :  { %5049 = vmatpush3.bf16.msra.mxu0 %v4708_v53  ;;  %5025 = vmatpush3.bf16.msra.mxu1 %v4694_v54 }
 0x3eb   :  { %5051 = vmatprep.subr.bf16.mxu0 %v4717_v55  ;;  %5027 = vmatprep.subr.bf16.mxu1 %v4703_v56  ;;  %v3834_v55 = vpack.c.bf16 %v3828_v51, %v3827_v50  ;;  %v3829_v56 = vld [vmem:[%s7208_s5 + $0x20] sm:$0xff] }
 0x3ee   :  { %5053 = vmatpush3.bf16.msra.mxu0 %v4709_v57  ;;  %5029 = vmatpush3.bf16.msra.mxu1 %v4695_v58  ;;  %v3830_v57 = vld [vmem:[%s7208_s5 + $0x28] sm:$0xff] }
 0x3ef   :  { %5055 = vmatprep.subr.bf16.mxu0 %v4718_v59  ;;  %5031 = vmatprep.subr.bf16.mxu1 %v4704_v60  ;;  %v3835_v58 = vpack.c.bf16 %v3830_v57, %v3829_v56  ;;  %v3831_v59 = vld [vmem:[%s7208_s5 + $0x30] sm:$0xff]  ;;  %v3832_v60 = vld [vmem:[%s7208_s5 + $0x38] sm:$0xff] }
 0x3f2   :  { %5057 = vmatpush3.bf16.msra.mxu0 %v4710_v61  ;;  %5033 = vmatpush3.bf16.msra.mxu1 %v4696_v62  ;;  %v3836_v61 = vpack.c.bf16 %v3832_v60, %v3831_v59 }
 0x3f3   :  { %5066 = vmatprep.subr.bf16.mxu1 %v5722_v29  ;;  %5059 = vmatprep.subr.bf16.mxu0 %v4719_v63 }
 0x3f6   :  { %5061 = vmatpush3.bf16.msra.mxu0 %v4711_v0  ;;  %v3943_v0 = vld [vmem:[%s7208_s5 + $0x68] sm:$0xff] }
 0x3f7   :  { %5063 = vmatprep.subr.bf16.mxu0 %v4720_v1  ;;  %v3944_v1 = vld [vmem:[%s7208_s5 + $0x70] sm:$0xff] }
 0x3fa   :  { %5065 = vmatpush3.bf16.msra.mxu0 %v4712_v2  ;;  %v3952_v2 = vpack.c.bf16 %v3944_v1, %v3943_v0 }
 0x3fb   :  { %4933 = vmatprep.subr.bf16.mxu0 %v5721_v28 }
 0x4a1   :  { %v3257_v3 = vpop.f32.mrb[24].mxu1 }
 0x4a2   :  { %v3259_v5 = vpop.f32.mrb[25].mxu1 }
 0x4a3   :  { %3620 = vmatprep.mubr.f32.mxu1 %v3259_v5 }
 0x4a4   :  { %3621 = vmatmul.mubr.f32.vlgmr.msra.gmra.mrb[28].mxu1 %v3257_v3  ;;  %v3945_v3 = vld [vmem:[%s7208_s5 + $0x78] sm:$0xff] }
 0x4a5   :  { %5068 = vmatpush3.bf16.msra.mxu1 %v4721_v6  ;;  %4930 = vmatprep.mubr.msk.f32.mxu1 %vm5723_vm2, %v5721_v28  ;;  %v3953_v5 = vpack.c.bf16 %v3946_v4, %v3945_v3  ;;  %v3947_v6 = vld [vmem:[%s7208_s5 + $0x88] sm:$0xff] }
 0x4a6   :  { %5069 = vmatprep.subr.bf16.mxu1 %v5722_v29 }
 0x4a7   :  { %v3328_v9 = vpop.f32.mrb[26].mxu1 }
 0x4a8   :  { %v3330_v11 = vpop.f32.mrb[27].mxu1 }
 0x4a9   :  { %5071 = vmatpush3.bf16.msra.mxu1 %v4722_v8  ;;  %3690 = vmatprep.mubr.f32.mxu0 %v3330_v11  ;;  %v3954_v8 = vpack.c.bf16 %v3948_v7, %v3947_v6 }
 0x4aa   :  { %3691 = vmatmul.mubr.f32.vlgmr.msra.gmra.mrb[30].mxu0 %v3328_v9  ;;  %5072 = vmatprep.subr.bf16.mxu1 %v5722_v29  ;;  %v3949_v9 = vld [vmem:[%s7208_s5 + $0x98] sm:$0xff] }
 0x4ab   :  { %4934 = vmatpush3.bf16.msra.mxu0 %v3782_v12  ;;  %4935 = vmatprep.mubr.msk.bf16.mxu0 %vm5723_vm2, %v5721_v28  ;;  %v3955_v11 = vpack.c.bf16 %v3950_v10, %v3949_v9  ;;  %v4007_v12 = vld [vmem:[%s7208_s5 + $0xa8] sm:$0xff] }
 0x4ac   :  { %4939 = vmatprep.subr.bf16.mxu0 %v5721_v28 }
 0x4ad   :  { %5074 = vmatpush3.bf16.msra.mxu1 %v4723_v13  ;;  %v4008_v13 = vld [vmem:[%s7208_s5 + $0xb0] sm:$0xff] }
 0x4ae   :  { %4936 = vmatmul.mubr.msk.bf16.vlgmr.msra.gmra.mrb[32].mxu0 %vm3776_vm6, %v3768_v14  ;;  %5075 = vmatprep.subr.bf16.mxu1 %v5722_v29  ;;  %v3837_v29 = vld [vmem:[%s7208_s5 + $0x40] sm:$0xff]  ;;  %v4012_v14 = vpack.c.bf16 %v4008_v13, %v4007_v12 }
 0x4af   :  { %4943 = vmatprep.mubr.msk.bf16.mxu0 %vm5723_vm2, %v5721_v28  ;;  %v3840_v19 = vpack.c.bf16 %v3838_v18, %v3837_v29  ;;  %v4538_v18 = vld [vmem:[%s7208_s5 + $0xf0] ss:$0 sm:$0xff] }
 0x4b0   :  { %v3399_v16 = vpop.f32.mrb[28].mxu0 }
 0x4b1   :  { %5077 = vmatpush3.bf16.msra.mxu1 %v4724_v15  ;;  %v4913_v17 = vpop.f32.mrb[29].mxu0  ;;  %4940 = vmatpush3.bf16.msra.mxu0 %v3840_v19 }
 0x4b2   :  { %4959 = vmatprep.subr.bf16.mxu1 %v5721_v28  ;;  %4941 = vmatprep.subr.bf16.mxu0 %v5721_v28 }
 0x4b4   :  { %4931 = vmatmul.mubr.msk.f32.vlgmr.msra.gmra.mrb[30].mxu1 %vm2973_vm1, %v3399_v16 }
 0x4b5   :  { %4969 = vmatprep.mubr.msk.bf16.mxu1 %vm5723_vm2, %v5721_v28  ;;  %4942 = vmatpush3.bf16.msra.mxu0 %v3850_v22 }
 0x4b6   :  { %4947 = vmatprep.subr.bf16.mxu0 %v5721_v28  ;;  %4960 = vmatpush3.bf16.msra.mxu1 %v3951_v25 }
 0x4b7   :  { %4961 = vmatprep.subr.bf16.mxu1 %v5721_v28 }
 0x4ba   :  { %4962 = vmatpush3.bf16.msra.mxu1 %v3952_v2 }
 0x4bb   :  { %4963 = vmatprep.subr.bf16.mxu1 %v5721_v28 }
 0x4be   :  { %4964 = vmatpush3.bf16.msra.mxu1 %v3953_v5 }
 0x4bf   :  { %4965 = vmatprep.subr.bf16.mxu1 %v5721_v28 }
 0x4c2   :  { %4966 = vmatpush3.bf16.msra.mxu1 %v3954_v8 }
 0x4c3   :  { %4967 = vmatprep.subr.bf16.mxu1 %v5721_v28 }
 0x4c6   :  { %4968 = vmatpush3.bf16.msra.mxu1 %v3955_v11 }
 0x4c7   :  { %4983 = vmatprep.subr.bf16.mxu1 %v5721_v28 }
 0x577   :  { %v4823_v27 = vpop.f32.mrb[28].mxu1 }
 0x578   :  { %v4824_v31 = vpop.f32.mrb[29].mxu1 }
 0x579   :  { %v4825_v32 = vadd.f32 %v4824_v31, %v4823_v27  ;;  %v4009_v27 = vld [vmem:[%s7208_s5 + $0xb8] sm:$0xff] }
 0x57a   :  { %v4013_v31 = vpack.c.bf16 %v4010_v30, %v4009_v27 }
 0x57b   :  { %v3623_v36 = vadd.f32 %v4825_v32, %v3552_v33  ;;  %v4011_v32 = vld [vmem:[%s7208_s5 + $0xc8] sm:$0xff] }
 0x57c   :  { %v4014_v33 = vpack.c.bf16 %v4011_v32, %v4011_v32 }
 0x57d   :  { %v4858_v34 = vpop.f32.mrb[30].mxu0 }
 0x57e   :  { %v4859_v35 = vpop.f32.mrb[31].mxu0 }
 0x57f   :  { %v4860_v37 = vadd.f32 %v4859_v35, %v4858_v34  ;;  %v4026_v34 = vsel %vm3780_vm5, %v4014_v33, 0  ;;  %v4539_v35 = vld [vmem:[%s7208_s5 + $0xf8] ss:$0 sm:$0xff] }
 0x581   :  { %v3818_v39 = vpop.f32.mrb[32].mxu0  ;;  %v3693_v40 = vadd.f32 %v4860_v37, %v3623_v36 }
 0x582   :  { %v3819_v41 = vadd.f32 %v4534_v38, %v3818_v39  ;;  %v4937_v44 = vpop.f32.mrb[33].mxu0 }
 0x583   :  { %v3821_v45 = vpop.f32.mrb[34].mxu0  ;;  %v4070_v44 = vld [vmem:[%s7208_s5 + $0xd8] sm:$0xff] }
 0x584   :  { %v3824_v46 = vmax.f32 %v3819_v41, 0.0  ;;  %v4938_v47 = vpop.f32.mrb[35].mxu0  ;;  %v4072_v45 = vpack.c.bf16 %v4070_v44, %v4069_v43 }
 0x586   :  { %v3844_v49 = vpack.c.bf16 %v3824_v46, %v3824_v46  ;;  %v4071_v46 = vld [vmem:[%s7208_s5 + $0xe0] sm:$0xf] }
 0x587   :  { %v3762_v52 = vpop.f32.mrb[30].mxu1  ;;  %v4073_v47 = vpack.c.bf16 %v4071_v46, %v4071_v46 }
 0x588   :  { %v3763_v53 = vadd.f32 %v3762_v52, %v3693_v40  ;;  %4944 = vmatmul.mubr.msk.bf16.vlgmr.msra.gmra.mrb[36].mxu0 %vm3845_vm7, %v3844_v49  ;;  %v4932_v54 = vpop.f32.mrb[31].mxu1  ;;  %v4541_v49 = vld [vmem:[%s7208_s5 + $0x100] ss:$0 sm:$0xff] }
 0x589   :  { %4948 = vmatpush3.bf16.msra.mxu0 %v3833_v48  ;;  %4955 = vmatprep.mubr.msk.bf16.mxu0 %vm5723_vm2, %v5721_v28  ;;  %v4084_v48 = vsel %vm3175_vm3, %v4073_v47, 0 }
 0x58a   :  { %4949 = vmatprep.subr.bf16.mxu0 %v5721_v28  ;;  %v3766_v62 = vmax.f32 %v3763_v53, 0.0 }
 0x58c   :  { %v3843_v63 = vpack.c.bf16 %v3766_v62, %v3766_v62 }
 0x58d   :  { %4950 = vmatpush3.bf16.msra.mxu0 %v3834_v55 }
 0x58e   :  { %4951 = vmatprep.subr.bf16.mxu0 %v5721_v28 }
 0x591   :  { %4952 = vmatpush3.bf16.msra.mxu0 %v3835_v58 }
 0x592   :  { %4953 = vmatprep.subr.bf16.mxu0 %v5721_v28 }
 0x595   :  { %4954 = vmatpush3.bf16.msra.mxu0 %v3836_v61 }
 0x596   :  { %4973 = vmatprep.subr.bf16.mxu0 %v5721_v28 }
 0x598   :  { %4956 = vmatmul.mubr.msk.bf16.vlgmr.msra.gmra.mrb[40].mxu0 %vm2973_vm1, %v3843_v63 }
 0x599   :  { %4979 = vmatprep.mubr.msk.bf16.mxu0 %vm5723_vm2, %v5721_v28  ;;  %4974 = vmatpush3.bf16.msra.mxu0 %v4012_v14 }
 0x59a   :  { %4975 = vmatprep.subr.bf16.mxu0 %v5721_v28 }
 0x59d   :  { %4976 = vmatpush3.bf16.msra.mxu0 %v4013_v31 }
 0x59e   :  { %4977 = vmatprep.subr.bf16.mxu0 %v5721_v28 }
 0x5a1   :  { %4978 = vmatpush3.bf16.msra.mxu0 %v4026_v34 }
 0x65b   :  { %v3886_v15 = vpop.f32.mrb[36].mxu0 }
 0x65c   :  { %v4945_v16 = vpop.f32.mrb[37].mxu0 }
 0x65d   :  { %v3889_v17 = vpop.f32.mrb[38].mxu0 }
 0x65e   :  { %v4946_v29 = vpop.f32.mrb[39].mxu0 }
 0x66b   :  { %v3929_v19 = vpop.f32.mrb[40].mxu0 }
 0x66c   :  { %v3930_v20 = vadd.f32 %v3929_v19, %v3886_v15  ;;  %v4957_v21 = vpop.f32.mrb[41].mxu0 }
 0x66d   :  { %v3932_v22 = vpop.f32.mrb[42].mxu0 }
 0x66e   :  { %v3939_v23 = vadd.f32 %v4538_v18, %v3930_v20  ;;  %v4958_v24 = vpop.f32.mrb[43].mxu0 }
 0x670   :  { %v3940_v25 = vmax.f32 %v3939_v23, 0.0 }
 0x672   :  { %v3957_v26 = vpack.c.bf16 %v3940_v25, %v3940_v25 }
 0x674   :  { %4970 = vmatmul.mubr.msk.bf16.vlgmr.msra.gmra.mrb[32].mxu1 %vm3962_vm8, %v3957_v26 }
 0x675   :  { %4987 = vmatprep.mubr.msk.bf16.mxu1 %vm5723_vm2, %v5721_v28  ;;  %4984 = vmatpush3.bf16.msra.mxu1 %v4072_v45 }
 0x676   :  { %4985 = vmatprep.subr.bf16.mxu1 %v5721_v28  ;;  %v4543_v28 = vld [vmem:[%s7208_s5 + $0x108] ss:$0 sm:$0xff] }
 0x679   :  { %4986 = vmatpush3.bf16.msra.mxu1 %v4084_v48 }
 0x747   :  { %v4000_v36 = vpop.f32.mrb[32].mxu1 }
 0x748   :  { %v4001_v37 = vadd.f32 %v4539_v35, %v4000_v36  ;;  %v4971_v38 = vpop.f32.mrb[33].mxu1 }
 0x749   :  { %v4003_v39 = vpop.f32.mrb[34].mxu1 }
 0x74a   :  { %v4006_v40 = vmax.f32 %v4001_v37, 0.0  ;;  %v4972_v41 = vpop.f32.mrb[35].mxu1 }
 0x74c   :  { %v4016_v42 = vpack.c.bf16 %v4006_v40, %v4006_v40 }
 0x74e   :  { %4980 = vmatmul.mubr.msk.bf16.vlgmr.msra.gmra.mrb[44].mxu0 %vm4021_vm9, %v4016_v42 }
 0x821   :  { %v4062_v50 = vpop.f32.mrb[44].mxu0 }
 0x822   :  { %v4063_v51 = vadd.f32 %v4541_v49, %v4062_v50  ;;  %v4981_v52 = vpop.f32.mrb[45].mxu0 }
 0x823   :  { %v4065_v53 = vpop.f32.mrb[46].mxu0 }
 0x824   :  { %v4068_v54 = vmax.f32 %v4063_v51, 0.0  ;;  %v4982_v55 = vpop.f32.mrb[47].mxu0 }
 0x826   :  { %v4075_v56 = vpack.c.bf16 %v4068_v54, %v4068_v54 }
 0x828   :  { %4988 = vmatmul.mubr.msk.bf16.vlgmr.msra.gmra.mrb[36].mxu1 %vm3845_vm7, %v4075_v56 }
 0x8fb   :  { %v4120_v57 = vpop.f32.mrb[36].mxu1 }
 0x8fc   :  { %v4121_v58 = vadd.f32 %v4543_v28, %v4120_v57  ;;  %v4989_v59 = vpop.f32.mrb[37].mxu1 }
 0x8fd   :  { %v4123_v60 = vpop.f32.mrb[38].mxu1 }
 0x8fe   :  { %5694 = vtanh.f32 %v4121_v58  ;;  %v4990_v61 = vpop.f32.mrb[39].mxu1 }
 0x908   :  { %v5695_v62 = vpop.eup %5694 }
 0x909   :  { %4128 = vst.msk [vmem:[#allocation2] sm:$0x3] %vm4127_vm10, %v5695_v62 }
 0x90a   :  { %5707 = shalt.err (!%p5704_p4)
}
 0x90b   :  { %s5708_s3 = scalar_lea.hbm %s7209_s6, 32 }
 0x90c   :  { %p5709_p5 = scmp.ne.s32.totalorder %s7209_s6, %s5708_s3  ;;  %p5712_p6 = scmp.lt.u32.totalorder %s5708_s3, %s7209_s6 }
 0x90e   :  { %p5714_p7 = pnand %p5712_p6, %p5709_p5 }
 0x910   :  { %5717 = shalt.err (!%p5714_p7)
}
 0x911   :  { %4138 = dma.vmem_to_hbm [thread:$0]  %s4136_s10, 32, %s7209_s6, [#allocation3]  }
 0x912   :  { %5718 = dma.done.wait [#allocation3], 32  }
 0x913   :  { %5719 = vsyncadd [#allocation3], 4294967264 }
 0x914   :  { %4142 = vsyncpa [#allocation3], 1 }

</bundles_post_ra>
